<compile_context>
chip_gen: v7x
topology: tpu7x:2x2x1
jax: 0.10.0
libtpu: 0.0.40
codegen_flags: <defaults>
</compile_context>

<pallas_src>
import functools

import numpy as np
import jax
import jax.numpy as jnp
from jax import lax
from jax.experimental import pallas as pl
from jax.experimental.pallas import tpu as pltpu

IGNORE_LABEL = 5
NUM_CLASSES = 5
_MIN_TILE_M = 128      # anchor-row tile floor (keeps MXU/vreg tiles full)

CONFIGER = {
    "training": {
        "temperature": 0.07,
        "base_temperature": 0.07,
        "max_samples": 1024,
        "max_views": 10,
        "max_views_bg": 10,
        "dtm_perc": 50,
        "target_dtm_perc": 50,
        "target_max_views": 10,
        "target_max_views_bg": 10,
        "pixel_memory_size": 64,
        "segment_memory_size": 32,
        "print_pos_neg_hist": 1000,
        "train_iters": 10000,
        "val_interval": 1000,
    }
}


# ----------------------------------------------------------------------------
# Device-dependent tiling / VMEM budget
# ----------------------------------------------------------------------------
def _device_kind():
    try:
        return jax.devices()[0].device_kind.lower()
    except Exception:
        return ""


def _pick_tile_m(anchor_cap):
    kind = _device_kind()
    if "v7" in kind:
        # v7x: 64 MiB VMEM per TensorCore; keep tiles at 128 so there are
        # always >=2 row tiles and both TCs get work under parallel semantics.
        # TODO(synk): switch to pltpu.CORE_PARALLEL if plain "parallel" does not
        # shard the row axis across the two v7x TensorCores.
        return 128
    # 128-MiB-VMEM parts (v5e/v6e): bigger row tiles cut the ~0.35 us/step
    # pipeline overhead once there are enough anchors.
    if anchor_cap >= 1024:
        return 512
    if anchor_cap >= 512:
        return 256
    return _MIN_TILE_M


def _vmem_limit_bytes(tile_m, nt, d):
    # Live per-tile temps (logits / shifted / exp / log_prob / boolean masks)
    # are O(tile_m * nt) f32; the contrast block is resident once in bf16
    # (double-buffered by the pipeline), the anchor tile is (tile_m, d) f32.
    est = (8 * tile_m * nt * 4          # f32 live temporaries (generous count)
           + 2 * d * nt * 2             # bf16 contrast, double-buffered
           + 2 * tile_m * d * 4         # f32 anchor tile, double-buffered
           + 2 * (tile_m + nt) * 4      # labels
           + (2 << 20))                 # outputs + slack
    cap = (48 << 20) if "v7" in _device_kind() else (96 << 20)
    # TODO(synk): for very large anchor capacities (Nt >~ 8-12K on v7x) add a
    # column grid axis with an online log-sum-exp so live temps are
    # (TILE_M, TILE_N) instead of (TILE_M, Nt); not needed at these caps.
    return int(min(max(est, 16 << 20), cap))


# ----------------------------------------------------------------------------
# Pallas kernel: one anchor-row tile of the supervised contrastive loss
# (_pixel_contrastive hot path)
# ----------------------------------------------------------------------------
def _contrastive_kernel(a_ref, ct_ref, ya_ref, yc_ref, possum_ref,
                        *, inv_temp, tile_m):
    """
    a_ref      : (TILE_M, D) f32  anchor features (current row tile)
    ct_ref     : (D, Nt)     bf16 contrast features^T (all anchors, detached,
                                  pre-cast in XLA — never re-cast per tile)
    ya_ref     : (TILE_M, 1) i32  anchor labels   (-1 = padding)
    yc_ref     : (1, Nt)     i32  contrast labels (-1 = padding)
    possum_ref : (1, TILE_M) f32  per-anchor sum_{j in P(i)} log_prob(i, j)
    """
    r = pl.program_id(0)

    # Fold 1/temperature into the small (TILE_M, D) operand instead of scaling
    # the (TILE_M, Nt) logits; bf16 MXU inputs with f32 accumulation.
    a = (a_ref[...] * inv_temp).astype(jnp.bfloat16)
    logits = jnp.dot(a, ct_ref[...], preferred_element_type=jnp.float32)  # (TM, Nt)

    ya = ya_ref[...]                      # (TM, 1) int32
    yc = yc_ref[...]                      # (1, Nt) int32
    tm, nt = logits.shape

    cols = lax.broadcasted_iota(jnp.int32, (tm, nt), 1)
    # Only a (TM, 1) column of global row indices — broadcast against `cols`
    # (saves a full-tile iota + add per tile vs. materializing a (TM, Nt) grid).
    row_ids = lax.broadcasted_iota(jnp.int32, (tm, 1), 0) + r * tile_m

    # Fused boolean masks (no f32 mask temporaries are materialized).
    eq = ya == yc                                    # same label
    pos_b = eq & (cols != row_ids)                   # positives, self-pair removed
    neg_b = jnp.logical_not(eq) & (yc >= 0)          # reference neg_mask, padding excluded

    # Detached row-max shift (matches reference; log_prob is shift invariant and
    # exp() stays bounded).  Padded zero-feature columns give logit exactly 0,
    # and the self-logit is ||a_i||^2 / T >= 0, so the max over all columns
    # equals the reference row max over real columns (no normalization needed).
    row_max = jnp.max(logits, axis=1, keepdims=True)
    shifted = logits - row_max
    exp_l = jnp.exp(shifted)
    neg_sum = jnp.sum(jnp.where(neg_b, exp_l, 0.0), axis=1, keepdims=True)
    log_prob = shifted - jnp.log(exp_l + neg_sum)
    # TODO(synk): on v6e/v7x a bf16 exp/log path (~2x EUP rate) is worth
    # measuring; kept f32 here for numerical parity with the torch reference.

    # Per-anchor sum of log_prob over positives.  The divide by |P(i)| and the
    # validity masking happen in the XLA epilogue (pos_cnt comes from an O(Na)
    # class histogram there), so no (TM, Nt) count reduction is done here.
    pos_sum = jnp.sum(jnp.where(pos_b, log_prob, 0.0), axis=1)   # (TM,)
    # Lane-dense store: one (1, TILE_M) row per tile (single unmasked vst and a
    # dense writeback DMA instead of a lane-width-1 strided store).
    possum_ref[...] = pos_sum.reshape(1, tile_m)


def _contrastive_loss(anchor_feat, anchor_labels, *, temperature, tile_m,
                      vmem_limit):
    """loss = mean over real anchors of -(1/|P(i)|) * sum_{j in P(i)} log_prob(i,j).

    NOTE: this spec's _pixel_contrastive has NO (temperature / base_temperature)
    rescale of the per-anchor loss (and with the given config the factor would
    be 1.0 anyway), so none is applied here.
    """
    na, d = anchor_feat.shape                  # na is a static multiple of tile_m
    a = anchor_feat.astype(jnp.float32)
    # Contrast operand (the detached anchors, transposed) pre-cast to bf16 ONCE
    # in XLA: halves its VMEM residency / HBM->VMEM bytes and removes a per-tile
    # full (D, Nt) cast from the kernel body.
    ct = a.T.astype(jnp.bfloat16)                       # (D, Na)
    ya = anchor_labels.astype(jnp.int32)[:, None]       # (Na, 1)
    yc = anchor_labels.astype(jnp.int32)[None, :]       # (1, Na)
    nt = na
    grid = (na // tile_m,)

    kernel = functools.partial(_contrastive_kernel,
                               inv_temp=1.0 / temperature, tile_m=tile_m)

    cost = pl.CostEstimate(
        flops=2 * na * nt * d,
        transcendentals=2 * na * nt,                     # exp + log per pair
        bytes_accessed=na * d * 4 + d * nt * 2 + (na + nt) * 4 + na * 4)

    per_pos_sum = pl.pallas_call(
        kernel,
        out_shape=jax.ShapeDtypeStruct((1, na), jnp.float32),
        grid=grid,
        in_specs=[
            pl.BlockSpec((tile_m, d), lambda r: (r, 0)),   # anchor row tile (f32)
            pl.BlockSpec((d, nt), lambda r: (0, 0)),       # full contrast^T (bf16, resident)
            pl.BlockSpec((tile_m, 1), lambda r: (r, 0)),   # anchor labels
            pl.BlockSpec((1, nt), lambda r: (0, 0)),       # contrast labels
        ],
        out_specs=pl.BlockSpec((1, tile_m), lambda r: (0, r)),   # lane-dense
        compiler_params=pltpu.CompilerParams(
            dimension_semantics=("parallel",),   # row tiles shard across TCs
            vmem_limit_bytes=vmem_limit),
        cost_estimate=cost,
    )(a, ct, ya, yc)

    pos_sum = per_pos_sum[0]                             # (Na,) f32

    # Epilogue in XLA (O(Na), not O(Na*Nt)):
    #   pos_cnt(i) = #{j != i : y_j == y_i} = class_histogram[y_i] - 1
    labels = anchor_labels.astype(jnp.int32)
    class_ids = jnp.arange(NUM_CLASSES, dtype=jnp.int32)
    counts = jnp.sum((labels[:, None] == class_ids[None, :]).astype(jnp.int32),
                     axis=0)                              # (C,)
    pos_cnt = jnp.where(
        labels >= 0,
        jnp.take(counts, jnp.clip(labels, 0, NUM_CLASSES - 1)) - 1,
        0).astype(jnp.float32)

    valid = pos_cnt > 0.0
    # Exact divide over a tiny (Na,) vector (addresses the approx-reciprocal concern).
    mean_lp = -pos_sum / jnp.maximum(pos_cnt, 1.0)

    # Reference `loss = mean_log_prob_pos.mean()` averages over ALL sampled
    # anchors; the sampler guarantees >=2 views per selected class, so every
    # real (non-padded) anchor has pos_cnt > 0 and the valid-anchor mean below
    # is identical.  Padded anchors (label -1) are excluded by `valid`.
    n_valid = jnp.sum(valid.astype(jnp.float32))
    return jnp.sum(jnp.where(valid, mean_lp, 0.0)) / jnp.maximum(n_valid, 1.0)


_contrastive_loss_jit = jax.jit(
    _contrastive_loss,
    static_argnames=("temperature", "tile_m", "vmem_limit"))


# ----------------------------------------------------------------------------
# Host glue: label interpolation + anchor sampling (data-dependent)
# ----------------------------------------------------------------------------
def _nearest_interp_labels_np(labels, out_hw):
    """torch.nn.functional.interpolate(mode='nearest') on (B, H, W) int labels."""
    B, H, W = labels.shape
    Ho, Wo = out_hw
    ri = (np.arange(Ho) * H) // Ho
    ci = (np.arange(Wo) * W) // Wo
    return labels[:, ri][:, :, ci]


def _anchor_sampling_np(feats_flat, labels_flat, max_views, max_views_bg):
    """Simplified deterministic stand-in for _dtm_anchor_sampling (host glue)."""
    # TODO(synk): DTM inside/boundary split (scipy euclidean distance transform +
    # np.percentile + np.random.choice) is dynamic-shape host code with no clean
    # Pallas equivalent; replaced with deterministic evenly-spaced per-class
    # pixel selection.
    X_list, y_list = [], []
    for ii in range(feats_flat.shape[0]):
        y_hat = labels_flat[ii]
        classes = [c for c in np.unique(y_hat)
                   if c != IGNORE_LABEL and int((y_hat == c).sum()) > 10]
        for c in classes:
            idx = np.nonzero(y_hat == c)[0]
            mv = max_views_bg if c == 0 else max_views
            n_sel = min(len(idx), mv)
            if n_sel < 2:
                continue
            sel = idx[np.linspace(0, len(idx) - 1, n_sel).astype(np.int64)]
            X_list.append(feats_flat[ii, sel, :])
            y_list.append(np.full(n_sel, c, dtype=np.int32))
    if not X_list:
        return None, None
    return (np.concatenate(X_list, axis=0).astype(np.float32),
            np.concatenate(y_list, axis=0).astype(np.int32))


def _prepare_anchors(source_feats, target_feats, source_labels, target_labels):
    """Label interp, NCHW -> (B, H*W, D), anchor sampling, fixed-capacity padding.

    Returns (X_padded, y_padded, X_real, y_real, tile_m); Nones if no anchors.
    """
    cfg = CONFIGER["training"]
    sf = np.asarray(source_feats)
    tf = np.asarray(target_feats)
    Bs, D, Hs, Ws = sf.shape
    Bt, _, Ht, Wt = tf.shape

    src_lab = _nearest_interp_labels_np(np.asarray(source_labels), (Hs, Ws)).reshape(Bs, -1)
    tgt_lab = _nearest_interp_labels_np(np.asarray(target_labels), (Ht, Wt)).reshape(Bt, -1)
    src_f = np.transpose(sf, (0, 2, 3, 1)).reshape(Bs, -1, D)
    tgt_f = np.transpose(tf, (0, 2, 3, 1)).reshape(Bt, -1, D)

    sX, sy = _anchor_sampling_np(src_f, src_lab, cfg["max_views"], cfg["max_views_bg"])
    tX, ty = _anchor_sampling_np(tgt_f, tgt_lab, cfg["target_max_views"],
                                 cfg["target_max_views_bg"])
    # TODO(synk): writer.add_histogram / visual.display_anchor_sampling_on_seg
    # side effects of the reference forward are logging-only and are skipped.

    parts = [(X, y) for X, y in ((sX, sy), (tX, ty)) if X is not None]
    if not parts:
        return None, None, None, None, None
    X = np.concatenate([p[0] for p in parts], axis=0)
    y = np.concatenate([p[1] for p in parts], axis=0)

    # Pad to a FIXED static capacity (multiple of the chosen row tile) so the
    # kernel compiles exactly once per configuration regardless of how many
    # anchors were sampled this step.
    cap0 = (Bs * NUM_CLASSES * max(cfg["max_views"], cfg["max_views_bg"])
            + Bt * NUM_CLASSES * max(cfg["target_max_views"], cfg["target_max_views_bg"]))
    tile_m = _pick_tile_m(max(cap0, _MIN_TILE_M))
    cap = max(tile_m, ((cap0 + tile_m - 1) // tile_m) * tile_m)
    n = min(X.shape[0], cap)
    Xp = np.zeros((cap, D), np.float32)
    Xp[:n] = X[:n]
    yp = np.full((cap,), -1, np.int32)          # label -1 marks padded anchors
    yp[:n] = y[:n]
    return Xp, yp, X[:n], y[:n], tile_m


def _reference_loss_np(X, y, temperature):
    """Pure NumPy float64 reference of _pixel_contrastive (for tolerance checks)."""
    X = np.asarray(X, np.float64)
    y = np.asarray(y)
    n = X.shape[0]
    logits = (X @ X.T) / temperature
    logits = logits - logits.max(axis=1, keepdims=True)
    mask = (y[:, None] == y[None, :]).astype(np.float64)
    neg_mask = 1.0 - mask
    mask = mask * (1.0 - np.eye(n))
    exp_logits = np.exp(logits)
    neg_logits = (exp_logits * neg_mask).sum(1, keepdims=True)
    log_prob = logits - np.log(exp_logits + neg_logits)
    mean_log_prob_pos = -(mask * log_prob).sum(1) / mask.sum(1)
    return float(mean_log_prob_pos.mean())


def pixel_contrast_loss_forward(source_feats, target_feats, source_labels,
                                target_labels, it=0):
    """PixelContrastLoss.forward: single supervised-contrastive loss over the
    concatenated source+target anchors (contrast set = the anchors themselves)."""
    cfg = CONFIGER["training"]
    Xp, yp, _, _, tile_m = _prepare_anchors(source_feats, target_feats,
                                            source_labels, target_labels)
    if Xp is None:
        return jnp.float32(0.0)
    vmem_limit = _vmem_limit_bytes(tile_m, Xp.shape[0], Xp.shape[1])
    return _contrastive_loss_jit(jnp.asarray(Xp), jnp.asarray(yp),
                                 temperature=cfg["temperature"],
                                 tile_m=tile_m, vmem_limit=vmem_limit)


if __name__ == "__main__":
    key = jax.random.PRNGKey(0)
    ks = jax.random.split(key, 4)

    B, D, Hf, Wf = 2, 32, 16, 16       # feature maps (NCHW)
    Hl, Wl = 32, 32                    # label maps (nearest-downsampled in forward)

    source_feats = jax.random.normal(ks[0], (B, D, Hf, Wf), jnp.float32)
    target_feats = jax.random.normal(ks[1], (B, D, Hf, Wf), jnp.float32)
    # L2-normalize embeddings along the channel dim (standard for contrastive feats).
    source_feats = source_feats / jnp.linalg.norm(source_feats, axis=1, keepdims=True)
    target_feats = target_feats / jnp.linalg.norm(target_feats, axis=1, keepdims=True)

    # labels in {0..4} plus ignore label 5
    source_labels = jax.random.randint(ks[2], (B, Hl, Wl), 0, NUM_CLASSES + 1)
    target_labels = jax.random.randint(ks[3], (B, Hl, Wl), 0, NUM_CLASSES + 1)

    loss = pixel_contrast_loss_forward(source_feats, target_feats,
                                       source_labels, target_labels, it=0)
    jax.block_until_ready(loss)
    assert bool(jnp.isfinite(loss)), loss

    # Tolerance check of the bf16-MXU Pallas path against an f64 reference of
    # the torch _pixel_contrastive math on the same sampled anchors.
    _, _, X_real, y_real, _ = _prepare_anchors(np.asarray(source_feats),
                                               np.asarray(target_feats),
                                               np.asarray(source_labels),
                                               np.asarray(target_labels))
    if X_real is not None:
        ref = _reference_loss_np(X_real, y_real, CONFIGER["training"]["temperature"])
        np.testing.assert_allclose(float(loss), ref, rtol=2e-2, atol=5e-2)

    print("KERNEL_OK")
</pallas_src>

<mosaic_0001>
module attributes {stable_mosaic.version = 11 : i64} {
  func.func @_contrastive_kernel(%arg0: i32, %arg1: memref<128x32xf32, #tpu.memory_space<vmem>>, %arg2: memref<32x256xbf16, #tpu.memory_space<vmem>>, %arg3: memref<128x1xi32, #tpu.memory_space<vmem>>, %arg4: memref<1x256xi32, #tpu.memory_space<vmem>>, %arg5: memref<1x128xf32, #tpu.memory_space<vmem>>) attributes {dimension_semantics = [#tpu.dimension_semantics<parallel>], iteration_bounds = array<i64: 2>, scalar_prefetch = 0 : i64, scratch_operands = 0 : i64, tpu.core_type = #tpu.core_type<tc>, window_params = [{transform_indices = @transform_0, window_bounds = array<i64: 128, 32>}, {pipeline_mode = #tpu.pipeline_mode<synchronous>, transform_indices = @transform_1, window_bounds = array<i64: 32, 256>}, {transform_indices = @transform_2, window_bounds = array<i64: 128, 1>}, {pipeline_mode = #tpu.pipeline_mode<synchronous>, transform_indices = @transform_3, window_bounds = array<i64: 1, 256>}, {transform_indices = @transform_4, window_bounds = array<i64: 1, 128>}]} {
    %c0 = arith.constant 0 : index
    %c0_0 = arith.constant 0 : index
    %0 = vector.load %arg1[%c0, %c0_0] : memref<128x32xf32, #tpu.memory_space<vmem>>, vector<128x32xf32>
    %cst = arith.constant 14.2857141 : f32
    %1 = vector.broadcast %cst : f32 to vector<128x32xf32>
    %2 = arith.mulf %0, %1 : vector<128x32xf32>
    %3 = arith.truncf %2 : vector<128x32xf32> to vector<128x32xbf16>
    %c0_1 = arith.constant 0 : index
    %c0_2 = arith.constant 0 : index
    %4 = vector.load %arg2[%c0_1, %c0_2] : memref<32x256xbf16, #tpu.memory_space<vmem>>, vector<32x256xbf16>
    %cst_3 = arith.constant dense<0.000000e+00> : vector<128x256xf32>
    %5 = tpu.matmul %3, %4, %cst_3 {dimension_numbers = #tpu.dot_dimension_numbers<[1], [0], [0], [1], [0, 0, 1, 1], [], []>} : vector<128x32xbf16>, vector<32x256xbf16>, vector<128x256xf32> -> vector<128x256xf32>
    %c0_4 = arith.constant 0 : index
    %c0_5 = arith.constant 0 : index
    %6 = vector.load %arg3[%c0_4, %c0_5] : memref<128x1xi32, #tpu.memory_space<vmem>>, vector<128x1xi32>
    %c0_6 = arith.constant 0 : index
    %c0_7 = arith.constant 0 : index
    %7 = vector.load %arg4[%c0_6, %c0_7] : memref<1x256xi32, #tpu.memory_space<vmem>>, vector<1x256xi32>
    %8 = tpu.iota {dimensions = array<i32: 1>} : vector<128x256xi32>
    %9 = tpu.iota {dimensions = array<i32: 0>} : vector<128x1xi32>
    %c128_i32 = arith.constant 128 : i32
    %10 = arith.muli %arg0, %c128_i32 : i32
    %11 = vector.broadcast %10 : i32 to vector<128x1xi32>
    %12 = arith.addi %9, %11 : vector<128x1xi32>
    %13 = vector.broadcast %6 : vector<128x1xi32> to vector<128x256xi32>
    %14 = vector.broadcast %7 : vector<1x256xi32> to vector<128x256xi32>
    %15 = arith.cmpi eq, %13, %14 : vector<128x256xi32>
    %16 = vector.broadcast %12 : vector<128x1xi32> to vector<128x256xi32>
    %17 = arith.cmpi ne, %8, %16 : vector<128x256xi32>
    %18 = arith.andi %15, %17 : vector<128x256xi1>
    %cst_8 = arith.constant dense<true> : vector<128x256xi1>
    %19 = arith.xori %15, %cst_8 : vector<128x256xi1>
    %c0_i32 = arith.constant 0 : i32
    %20 = vector.broadcast %c0_i32 : i32 to vector<1x256xi32>
    %21 = arith.cmpi sge, %7, %20 : vector<1x256xi32>
    %22 = vector.broadcast %21 : vector<1x256xi1> to vector<128x256xi1>
    %23 = arith.andi %19, %22 : vector<128x256xi1>
    %cst_9 = arith.constant dense<0xFF800000> : vector<128xf32>
    %24 = vector.multi_reduction <maximumf>, %5, %cst_9 [1] : vector<128x256xf32> to vector<128xf32>
    %25 = vector.shape_cast %24 : vector<128xf32> to vector<128x1xf32>
    %26 = vector.broadcast %25 : vector<128x1xf32> to vector<128x256xf32>
    %27 = arith.subf %5, %26 : vector<128x256xf32>
    %28 = math.exp %27 : vector<128x256xf32>
    %cst_10 = arith.constant 0.000000e+00 : f32
    %29 = vector.broadcast %cst_10 : f32 to vector<128x256xf32>
    %30 = arith.select %23, %28, %29 : vector<128x256xi1>, vector<128x256xf32>
    %cst_11 = arith.constant dense<0.000000e+00> : vector<128xf32>
    %31 = vector.multi_reduction <add>, %30, %cst_11 [1] : vector<128x256xf32> to vector<128xf32>
    %32 = vector.shape_cast %31 : vector<128xf32> to vector<128x1xf32>
    %33 = vector.broadcast %32 : vector<128x1xf32> to vector<128x256xf32>
    %34 = arith.addf %28, %33 : vector<128x256xf32>
    %35 = math.log %34 : vector<128x256xf32>
    %36 = arith.subf %27, %35 : vector<128x256xf32>
    %cst_12 = arith.constant 0.000000e+00 : f32
    %37 = vector.broadcast %cst_12 : f32 to vector<128x256xf32>
    %38 = arith.select %18, %36, %37 : vector<128x256xi1>, vector<128x256xf32>
    %cst_13 = arith.constant dense<0.000000e+00> : vector<128xf32>
    %39 = vector.multi_reduction <add>, %38, %cst_13 [1] : vector<128x256xf32> to vector<128xf32>
    %40 = vector.shape_cast %39 : vector<128xf32> to vector<1x128xf32>
    %c0_14 = arith.constant 0 : index
    %c0_15 = arith.constant 0 : index
    %41 = vector.load %arg5[%c0_14, %c0_15] : memref<1x128xf32, #tpu.memory_space<vmem>>, vector<1x128xf32>
    tpu.vector_store %arg5[%c0_14, %c0_15], %40 {strides = array<i32>} : memref<1x128xf32, #tpu.memory_space<vmem>>, vector<1x128xf32>,
    return
  }
  func.func @transform_0(%arg0: i32) -> (i32, i32) {
    %c0_i32 = arith.constant 0 : i32
    %c0_i32_0 = arith.constant 0 : i32
    return %arg0, %c0_i32 : i32, i32
  }
  func.func @transform_1(%arg0: i32) -> (i32, i32) {
    %c0_i32 = arith.constant 0 : i32
    %c0_i32_0 = arith.constant 0 : i32
    %c0_i32_1 = arith.constant 0 : i32
    return %c0_i32, %c0_i32_0 : i32, i32
  }
  func.func @transform_2(%arg0: i32) -> (i32, i32) {
    %c0_i32 = arith.constant 0 : i32
    %c0_i32_0 = arith.constant 0 : i32
    return %arg0, %c0_i32 : i32, i32
  }
  func.func @transform_3(%arg0: i32) -> (i32, i32) {
    %c0_i32 = arith.constant 0 : i32
    %c0_i32_0 = arith.constant 0 : i32
    %c0_i32_1 = arith.constant 0 : i32
    return %c0_i32, %c0_i32_0 : i32, i32
  }
  func.func @transform_4(%arg0: i32) -> (i32, i32) {
    %c0_i32 = arith.constant 0 : i32
    %c0_i32_0 = arith.constant 0 : i32
    return %c0_i32, %arg0 : i32, i32
  }
}

</mosaic_0001>

<bundles_post_ra>
// kernel: neg.0
= control target key start
LH: loop header
LB: loop body
LE: loop exit
PB: predicated region body
PF: predicated region fallthrough
CT: control target
= control target key end

     0   :  { %s40_s0 = inlined_call_operand.vmem [shape: f32[1,256], index: 0, kind: input, shape index: {}]   ;;  %s41_s1 = inlined_call_operand.vmem [shape: f32[1,256], index: 1, kind: output, shape index: {}]  }
   0x1   :  { %v2_v0 = vld [vmem:[%s40_s0] sm:$0x1]  ;;  %v16_v1 = vld [vmem:[%s40_s0 + $0x1] sm:$0x1] }
   0x2   :  { %v5_v2 = vxor.u32 2147483648, %v2_v0  ;;  %v12_v3 = vxor.u32 2147483648, %v16_v1 }
   0x4   :  { %7 = vst [vmem:[%s41_s1] sm:$0x1] %v5_v2  ;;  %17 = vst [vmem:[%s41_s1 + $0x1] sm:$0x1] %v12_v3 }

// kernel: _contrastive_loss.1
= control target key start
LH: loop header
LB: loop body
LE: loop exit
PB: predicated region body
PF: predicated region fallthrough
CT: control target
= control target key end

     0   :  { %s1531_s15 = smov 0   ;;  %s3132_s0 = inlined_call_operand.vmem [shape: f32[256,32], index: 0, kind: input, shape index: {}]   ;;  %s3133_s1 = inlined_call_operand.vmem [shape: bf16[32,256], index: 1, kind: input, shape index: {}]   ;;  %s3134_s2 = inlined_call_operand.vmem [shape: s32[256,1], index: 2, kind: input, shape index: {}]   ;;  %s3135_s3 = inlined_call_operand.vmem [shape: s32[1,256], index: 3, kind: input, shape index: {}]   ;;  %s3136_s4 = inlined_call_operand.vmem [shape: f32[1,256], index: 4, kind: output, shape index: {}]  }
   0x1 LB: > { %s1537_s16 = sadd.s32 4294967295, %s1502_s15   ;;  %p1326_p0 = scmp.ge.s32.totalorder %s1502_s15, 1  ;;  %s1502_s15 = sphi %s1531_s15, %s14_s15  }
   0x2   : > { %p174_p1 = scmp.lt.s32.totalorder %s1502_s15, 3 }
   0x4   : > { %p175_p2 = pnand %p1326_p0, %p174_p1 }
   0x6   : > { %178 = sbr.rel (%p175_p2) target bundleno = 784 (0x310), region = 36 }
   0xd   : > { %v1362_v0 = vld [vmem:[%s3133_s1 + $0x4] ss:$8 sps:$4 sm:$0xff]   ;;  %s1327_s19 = sshll.u32 %s1537_s16, 4  ;;  %v1364_v1 = vld [vmem:[%s3133_s1] ss:$8 sps:$4 sm:$0xff]   ;;  %v1504_v2 = vmov 0  }
   0xe   : > { %340 = vmatprep.mubr.bf16.mxu0 %v1504_v2  ;;  %380 = vmatprep.mubr.bf16.mxu1 %v1504_v2  ;;  %p204_p3 = scmp.lt.s32.totalorder %s1327_s19, 31  ;;  %v1365_v3 = vld [vmem:[%s3133_s1 + $0x14] ss:$8 sps:$4 sm:$0xff]   ;;  %v1367_v4 = vld [vmem:[%s3133_s1 + $0x10] ss:$8 sps:$4 sm:$0xff]   ;;  %vm283_vm0 = vcmask 261120  }
   0xf   : > { %308 = vmatprep.subr.bf16.mxu0 %v1362_v0  ;;  %1346 = vmatprep.subr.bf16.mxu1 %v1362_v0  ;;  %s1343_s9 = sshll.u32 %s1537_s16, 7  ;;  %p215_p4 = scmp.lt.s32.totalorder %s1537_s16, 1 }
  0x10   : > { %309 = vmatpush1.bf16.msra.mxu0 %v1364_v1  ;;  %1348 = vmatpush1.bf16.msra.mxu1 %v1364_v1  ;;  %s3532_s19 = smov (!%p204_p3, %s1327_s19), 31 }
  0x11   : > { %310 = vmatprep.subr.bf16.mxu0 %v1365_v3  ;;  %1347 = vmatprep.subr.bf16.mxu1 %v1365_v3  ;;  %s1328_s26 = sshll.u32 %s3532_s19, 3  ;;  %s3534_s16 = smov (!%p215_p4, %s1537_s16), 1 }
  0x12   : > { %1361 = vset.pattern.permute.xlu1 %v1504_v2  ;;  %1360 = vset.pattern.permute.xlu0 %v1504_v2  ;;  %s1561_s29 = scalar_lea.vmem %s3132_s0, %s1328_s26  ;;  %s1575_s6 = scalar_lea.vmem %s3134_s2, %s1328_s26 }
  0x13   : > { %v219_v5 = vld [vmem:[%s1561_s29] sm:$0xff]  ;;  %v220_v6 = vld [vmem:[%s1561_s29 + $0x8] sm:$0xff]  ;;  %v221_v13 = vld [vmem:[%s1561_s29 + $0x10] sm:$0xff]  ;;  %s217_s12 = scalar_lea.vmem %s3136_s4, %s3534_s16 }
  0x14   : > { %311 = vmatpush1.bf16.msra.mxu0 %v1367_v4  ;;  %1349 = vmatpush1.bf16.msra.mxu1 %v1367_v4  ;;  %v227_v7 = vld [vmem:[%s1561_s29 + $0x40] sm:$0xff]  ;;  %v235_v8 = vmul.f32 14.285714, %v219_v5  ;;  %v236_v9 = vmul.f32 14.285714, %v220_v6  ;;  %v228_v10 = vld [vmem:[%s1561_s29 + $0x48] sm:$0xff] }
  0x15   : > { %v243_v11 = vmul.f32 14.285714, %v227_v7  ;;  %v244_v12 = vmul.f32 14.285714, %v228_v10  ;;  %v222_v14 = vld [vmem:[%s1561_s29 + $0x18] sm:$0xff]  ;;  %v229_v16 = vld [vmem:[%s1561_s29 + $0x50] sm:$0xff] }
  0x16   : > { %v251_v15 = vpack.c.bf16 %v236_v9, %v235_v8  ;;  %v230_v18 = vld [vmem:[%s1561_s29 + $0x58] sm:$0xff]  ;;  %v237_v19 = vmul.f32 14.285714, %v221_v13  ;;  %v238_v20 = vmul.f32 14.285714, %v222_v14  ;;  %v422_v23 = vld [vmem:[%s1575_s6 + $0x8] sm:$0xff] }
  0x17   : > { %v255_v17 = vpack.c.bf16 %v244_v12, %v243_v11  ;;  %v245_v21 = vmul.f32 14.285714, %v229_v16  ;;  %v246_v22 = vmul.f32 14.285714, %v230_v18  ;;  %480 = vperm.xlu1 %1361, %v422_v23   ;;  %v223_v26 = vld [vmem:[%s1561_s29 + $0x20] sm:$0xff]  ;;  %v224_v27 = vld [vmem:[%s1561_s29 + $0x28] sm:$0xff] }
  0x18   : > { %1335 = vmatmul.mubr.msk.bf16.vlgmr.msra.gmra.mrb[0].mxu0 %vm283_vm0, %v251_v15  ;;  %v252_v24 = vpack.c.bf16 %v238_v20, %v237_v19  ;;  %v423_v28 = vld [vmem:[%s1575_s6 + $0x10] sm:$0xff]  ;;  %v231_v29 = vld [vmem:[%s1561_s29 + $0x60] sm:$0xff]  ;;  %v232_v30 = vld [vmem:[%s1561_s29 + $0x68] sm:$0xff]  ;;  %v239_v32 = vmul.f32 14.285714, %v223_v26 }
  0x19   : > { %1339 = vmatmul.mubr.msk.bf16.vlgmr.msra.gmra.mrb[0].mxu1 %vm283_vm0, %v255_v17  ;;  %350 = vmatprep.mubr.bf16.mxu0 %v1504_v2  ;;  %v256_v25 = vpack.c.bf16 %v246_v22, %v245_v21  ;;  %v421_v31 = vld [vmem:[%s1575_s6] sm:$0xff]  ;;  %v240_v33 = vmul.f32 14.285714, %v224_v27  ;;  %v247_v34 = vmul.f32 14.285714, %v231_v29  ;;  %v424_v36 = vld [vmem:[%s1575_s6 + $0x18] sm:$0xff] }
  0x1a   : > { %390 = vmatprep.mubr.bf16.mxu1 %v1504_v2  ;;  %v248_v35 = vmul.f32 14.285714, %v232_v30  ;;  %477 = vperm.xlu0 %1360, %v421_v31   ;;  %v430_v37 = vld [vmem:[%s1575_s6 + $0x48] sm:$0xff]  ;;  %v225_v40 = vld [vmem:[%s1561_s29 + $0x30] sm:$0xff]  ;;  %v226_v41 = vld [vmem:[%s1561_s29 + $0x38] sm:$0xff] }
  0x1b   : > { %483 = vperm.xlu1 %1361, %v423_v28   ;;  %v253_v38 = vpack.c.bf16 %v240_v33, %v239_v32  ;;  %v425_v42 = vld [vmem:[%s1575_s6 + $0x20] sm:$0xff]  ;;  %v233_v43 = vld [vmem:[%s1561_s29 + $0x70] sm:$0xff]  ;;  %v234_v44 = vld [vmem:[%s1561_s29 + $0x78] sm:$0xff]  ;;  %v241_v46 = vmul.f32 14.285714, %v225_v40 }
  0x1c   : > { %v257_v39 = vpack.c.bf16 %v248_v35, %v247_v34  ;;  %v432_v45 = vld [vmem:[%s1575_s6 + $0x58] sm:$0xff]  ;;  %v242_v47 = vmul.f32 14.285714, %v226_v41  ;;  %v249_v48 = vmul.f32 14.285714, %v233_v43  ;;  %v426_v50 = vld [vmem:[%s1575_s6 + $0x28] sm:$0xff] }
  0x1d   : > { %v250_v49 = vmul.f32 14.285714, %v234_v44  ;;  %v434_v51 = vld [vmem:[%s1575_s6 + $0x68] sm:$0xff]  ;;  %v427_v54 = vld [vmem:[%s1575_s6 + $0x30] sm:$0xff]  ;;  %v428_v55 = vld [vmem:[%s1575_s6 + $0x38] sm:$0xff] }
  0x1e   : > { %504 = vperm.xlu0 %1360, %v430_v37   ;;  %v254_v52 = vpack.c.bf16 %v242_v47, %v241_v46  ;;  %v429_v56 = vld [vmem:[%s1575_s6 + $0x40] sm:$0xff]  ;;  %v431_v57 = vld [vmem:[%s1575_s6 + $0x50] sm:$0xff] }
  0x1f   : > { %486 = vperm.xlu1 %1361, %v424_v36   ;;  %v258_v53 = vpack.c.bf16 %v250_v49, %v249_v48  ;;  %v433_v58 = vld [vmem:[%s1575_s6 + $0x60] sm:$0xff]  ;;  %v435_v44 = vld [vmem:[%s1575_s6 + $0x70] sm:$0xff] }
  0x20   : > { %1336 = vmatmul.mubr.msk.bf16.gmra.mrb[4].mxu0 %vm283_vm0, %v252_v24 }
  0x21   : > { %1340 = vmatmul.mubr.msk.bf16.gmra.mrb[4].mxu1 %vm283_vm0, %v256_v25  ;;  %360 = vmatprep.mubr.bf16.mxu0 %v1504_v2 }
  0x22   : > { %400 = vmatprep.mubr.bf16.mxu1 %v1504_v2  ;;  %510 = vperm.xlu0 %1360, %v432_v45   ;;  %v436_v45 = vld [vmem:[%s1575_s6 + $0x78] sm:$0xff] }
  0x23   : > { %489 = vperm.xlu1 %1361, %v425_v42  }
  0x26   : > { %516 = vperm.xlu0 %1360, %v434_v51  }
  0x27   : > { %492 = vperm.xlu1 %1361, %v426_v50  }
  0x28   : > { %1337 = vmatmul.mubr.msk.bf16.gmra.mrb[8].mxu0 %vm283_vm0, %v253_v38 }
  0x29   : > { %1341 = vmatmul.mubr.msk.bf16.gmra.mrb[8].mxu1 %vm283_vm0, %v257_v39  ;;  %370 = vmatprep.mubr.bf16.mxu0 %v1504_v2 }
  0x2a   : > { %410 = vmatprep.mubr.bf16.mxu1 %v1504_v2 }
  0x2b   : > { %495 = vperm.xlu1 %1361, %v427_v54  }
  0x2f   : > { %498 = vperm.xlu1 %1361, %v428_v55   ;;  %v3142_v55 = vlaneseq }
  0x30   : > { %1338 = vmatmul.mubr.msk.bf16.gmra.mrb[12].mxu0 %vm283_vm0, %v254_v52 }
  0x31   : > { %1342 = vmatmul.mubr.msk.bf16.gmra.mrb[12].mxu1 %vm283_vm0, %v258_v53  ;;  %vm1505_vm0 = vmmov 1  }
  0x33   : > { %501 = vperm.xlu1 %1361, %v429_v56  }
  0x37   : > { %507 = vperm.xlu1 %1361, %v431_v57  }
  0x3b   : > { %513 = vperm.xlu1 %1361, %v433_v58   ;;  %v1733_v58 = vshrl.u32 %v3142_v55, 7 }
  0x3d   : > { %3213 = vst [vmem:[#allocation9_spill] sm:$0xff] %v1733_v58 }
  0x96   : > { %v1710_v46 = vpop.permute.xlu1 %480 }
  0x97   : > { %3206 = vst [vmem:[#allocation2_spill] sm:$0xff] %v1710_v46 }
  0x99   : > { %v1722_v52 = vpop.permute.xlu0 %477 }
  0x9a   : > { %v1712_v47 = vpop.permute.xlu1 %483 }
  0x9b   : > { %3207 = vst [vmem:[#allocation3_spill] sm:$0xff] %v1712_v47 }
  0x9d   : > { %v1726_v54 = vpop.permute.xlu0 %504 }
  0x9e   : > { %v1714_v48 = vpop.permute.xlu1 %486  ;;  %3211 = vst [vmem:[#allocation7_spill] sm:$0xff] %v1726_v54 }
  0x9f   : > { %3208 = vst [vmem:[#allocation4_spill] sm:$0xff] %v1714_v48 }
  0xa1   : > { %v1730_v57 = vpop.permute.xlu0 %510 }
  0xa2   : > { %v1716_v49 = vpop.permute.xlu1 %489  ;;  %3212 = vst [vmem:[#allocation8_spill] sm:$0xff] %v1730_v57 }
  0xa6   : > { %v1718_v50 = vpop.permute.xlu1 %492 }
  0xa7   : > { %3209 = vst [vmem:[#allocation5_spill] sm:$0xff] %v1718_v50 }
  0xaa   : > { %v1720_v51 = vpop.permute.xlu1 %495 }
  0xae   : > { %v1724_v53 = vpop.permute.xlu1 %498 }
  0xaf   : > { %3210 = vst [vmem:[#allocation6_spill] sm:$0xff] %v1724_v53 }
  0xb2   : > { %v1728_v56 = vpop.permute.xlu1 %501 }
  0xeb   : > { %v1612_v59 = vpop.f32.mrb[0].mxu0 }
  0xec   : > { %v1614_v60 = vpop.f32.mrb[0].mxu1  ;;  %v1616_v61 = vpop.f32.mrb[1].mxu0 }
  0xed   : > { %v1618_v62 = vpop.f32.mrb[1].mxu1  ;;  %v1620_v63 = vpop.f32.mrb[2].mxu0  ;;  %v704_v0 = vmax.f32 %v1612_v59, %v1616_v61 }
  0xee   : > { %v1624_v1 = vpop.f32.mrb[2].mxu1  ;;  %v1626_v3 = vpop.f32.mrb[3].mxu0  ;;  %v728_v4 = vmax.f32 %v1614_v60, %v1618_v62 }
  0xef   : > { %v1630_v5 = vpop.f32.mrb[3].mxu1  ;;  %705 = vmax.xlane.f32.xlu0 %v704_v0  ;;  %v707_v6 = vmax.f32 %v1620_v63, %v1626_v3  ;;  %v437_v0 = vld [vmem:[%s3135_s3] sm:$0x3] }
  0xf0   : > { %v731_v7 = vmax.f32 %v1624_v1, %v1630_v5  ;;  %vm660_vm1 = vcmp.ge.s32.totalorder %v437_v0, 0 }
  0xf2   : > { %732 = vmax.xlane.f32.xlu1 %v731_v7  ;;  %v530_v7 = vsub.s32 1, %v1733_v58 }
  0xf3   : > { %729 = vmax.xlane.f32.xlu0 %v728_v4  ;;  %v1636_v8 = vpop.f32.mrb[4].mxu0  ;;  %v1738_v4 = vpop.permute.xlu1 %507 }
  0xf4   : > { %v1638_v9 = vpop.f32.mrb[5].mxu0  ;;  %v1640_v10 = vpop.f32.mrb[4].mxu1  ;;  %3214 = vst [vmem:[#allocation10_spill] sm:$0xff] %v1738_v4 }
  0xf5   : > { %v1642_v11 = vpop.f32.mrb[6].mxu0  ;;  %v1644_v12 = vpop.f32.mrb[5].mxu1  ;;  %v710_v13 = vmax.f32 %v1636_v8, %v1638_v9 }
  0xf6   : > { %v1648_v14 = vpop.f32.mrb[7].mxu0  ;;  %v1650_v15 = vpop.f32.mrb[6].mxu1  ;;  %v734_v16 = vmax.f32 %v1640_v10, %v1644_v12 }
  0xf7   : > { %708 = vmax.xlane.f32.xlu0 %v707_v6  ;;  %711 = vmax.xlane.f32.xlu1 %v710_v13  ;;  %v1654_v17 = vpop.f32.mrb[7].mxu1  ;;  %v713_v18 = vmax.f32 %v1642_v11, %v1648_v14  ;;  %v526_v6 = vsub.s32 0, %v1733_v58  ;;  %v1742_v13 = vpop.permute.xlu0 %516 }
  0xf8   : > { %v737_v19 = vmax.f32 %v1650_v15, %v1654_v17  ;;  %3215 = vst [vmem:[#allocation11_spill] sm:$0xff] %v1742_v13 }
  0xfb   : > { %735 = vmax.xlane.f32.xlu0 %v734_v16  ;;  %714 = vmax.xlane.f32.xlu1 %v713_v18  ;;  %v1660_v20 = vpop.f32.mrb[8].mxu0  ;;  %v1744_v16 = vrot.slane %v437_v0, %v526_v6  ;;  %v1746_v18 = vrot.slane %v437_v0, %v530_v7 }
  0xfc   : > { %v1662_v21 = vpop.f32.mrb[9].mxu0  ;;  %v1664_v22 = vpop.f32.mrb[8].mxu1 }
  0xfd   : > { %v1666_v23 = vpop.f32.mrb[10].mxu0  ;;  %v1668_v24 = vpop.f32.mrb[9].mxu1  ;;  %v716_v25 = vmax.f32 %v1660_v20, %v1662_v21  ;;  %vm3138_vm2 = vcmp.eq.s32.totalorder %v1710_v46, %v1744_v16  ;;  %vm3140_vm3 = vcmp.eq.s32.totalorder %v1710_v46, %v1746_v18  ;;  %vm3146_vm4 = vcmp.eq.s32.totalorder %v1712_v47, %v1744_v16 }
  0xfe   : > { %v1672_v26 = vpop.f32.mrb[11].mxu0  ;;  %v1674_v27 = vpop.f32.mrb[10].mxu1  ;;  %v740_v28 = vmax.f32 %v1664_v22, %v1668_v24  ;;  %vm3149_vm5 = vcmp.eq.s32.totalorder %v1712_v47, %v1746_v18  ;;  %vm3141_vm6 = vcmp.eq.s32.totalorder %v1722_v52, %v1744_v16  ;;  %vm3148_vm8 = vcmp.eq.s32.totalorder %v1722_v52, %v1746_v18  ;;  %vm1831_vm15 = vmxor %vm3138_vm2, %vm1505_vm0 }
  0xff   : > { %738 = vmax.xlane.f32.xlu1 %v737_v19  ;;  %717 = vmax.xlane.f32.xlu0 %v716_v25  ;;  %v1678_v29 = vpop.f32.mrb[11].mxu1  ;;  %v719_v30 = vmax.f32 %v1666_v23, %v1672_v26  ;;  %v661_v19 = vsel %vm660_vm1, 1, %v1504_v2  ;;  %v1749_v25 = vpop.permute.xlu1 %513  ;;  %vm3153_vm9 = vcmp.eq.s32.totalorder %v1714_v48, %v1744_v16  ;;  %vm3137_vm10 = vcmp.eq.s32.totalorder %v1728_v56, %v1744_v16  ;;  %vm1852_vm2 = vmxor %vm3140_vm3, %vm1505_vm0 }
 0x100   : > { %v743_v31 = vmax.f32 %v1674_v27, %v1678_v29  ;;  %3216 = vst [vmem:[#allocation12_spill] sm:$0xff] %v1749_v25  ;;  %vm3139_vm13 = vcmp.eq.s32.totalorder %v1728_v56, %v1746_v18  ;;  %vm3150_vm14 = vcmp.eq.s32.totalorder %v1726_v54, %v1744_v16  ;;  %vm1818_vm1 = vmxor %vm3137_vm10, %vm1505_vm0 }
 0x101   : > { %vm1841_vm11 = vmxor %vm3139_vm13, %vm1505_vm0 }
 0x102   : > { %vm1862_vm10 = vmxor %vm3141_vm6, %vm1505_vm0 }
 0x103   : > { %741 = vmax.xlane.f32.xlu0 %v740_v28  ;;  %720 = vmax.xlane.f32.xlu1 %v719_v30  ;;  %v1684_v32 = vpop.f32.mrb[12].mxu0  ;;  %vm1875_vm13 = vmxor %vm3146_vm4, %vm1505_vm0 }
 0x104   : > { %v1686_v33 = vpop.f32.mrb[13].mxu0  ;;  %v1688_v34 = vpop.f32.mrb[12].mxu1  ;;  %vm1885_vm3 = vmxor %vm3148_vm8, %vm1505_vm0 }
 0x105   : > { %v1690_v35 = vpop.f32.mrb[14].mxu0  ;;  %v722_v36 = vmax.f32 %v1684_v32, %v1686_v33  ;;  %v1694_v37 = vpop.f32.mrb[13].mxu1  ;;  %vm1902_vm4 = vmxor %vm3149_vm5, %vm1505_vm0 }
 0x106   : > { %v1696_v38 = vpop.f32.mrb[15].mxu0  ;;  %v1698_v39 = vpop.f32.mrb[14].mxu1  ;;  %v746_v40 = vmax.f32 %v1688_v34, %v1694_v37  ;;  %vm1916_vm7 = vmxor %vm3150_vm14, %vm1505_vm0 }
 0x107   : > { %v725_v41 = vmax.f32 %v1690_v35, %v1696_v38  ;;  %744 = vmax.xlane.f32.xlu1 %v743_v31  ;;  %723 = vmax.xlane.f32.xlu0 %v722_v36  ;;  %v1704_v42 = vpop.f32.mrb[15].mxu1  ;;  %v1757_v36 = vrot.slane %v661_v19, %v526_v6  ;;  %vm1929_vm5 = vmxor %vm3153_vm9, %vm1505_vm0  ;;  %vm3250_vm9 = vcmp.eq.s32.totalorder %v1714_v48, %v1746_v18 }
 0x108   : > { %v749_v43 = vmax.f32 %v1698_v39, %v1704_v42  ;;  %vm1952_vm14 = vmxor %vm3250_vm9, %vm1505_vm0  ;;  %vm3256_vm9 = vcmp.eq.s32.totalorder %v1738_v4, %v1744_v16 }
 0x109   : > { %vm3247_vm8 = vcmp.eq.s32.totalorder %v1757_v36, 1  ;;  %vm1974_vm6 = vmxor %vm3256_vm9, %vm1505_vm0  ;;  %vm3272_vm9 = vcmp.eq.s32.totalorder %v1730_v57, %v1744_v16 }
 0x10a   : > { %vm1942_vm12 = vmand %vm1862_vm10, %vm3247_vm8  ;;  %vm3253_vm8 = vcmp.eq.s32.totalorder %v1726_v54, %v1746_v18 }
 0x10b   : > { %747 = vmax.xlane.f32.xlu0 %v746_v40  ;;  %726 = vmax.xlane.f32.xlu1 %v725_v41  ;;  %v1759_v40 = vrot.slane %v661_v19, %v530_v7  ;;  %vm1962_vm10 = vmxor %vm3253_vm8, %vm1505_vm0 }
 0x10f   : > { %750 = vmax.xlane.f32.xlu1 %v749_v43 }
 0x120   : > { %519 = vperm.xlu1 %1361, %v435_v44  }
 0x121   : > { %522 = vperm.xlu0 %1360, %v436_v45  }
 0x17c   : > { %v706_v28 = vpop.xlane.xlu0 %705 }
 0x17d   : > { %v1752_v30 = vsub.f32 %v1612_v59, %v706_v28  ;;  %v1755_v31 = vsub.f32 %v1616_v61, %v706_v28 }
 0x17f   : > { %v784_v2 = vmul.f32 1.442695, %v1752_v30  ;;  %v786_v41 = vmul.f32 1.442695, %v1755_v31  ;;  %v733_v43 = vpop.xlane.xlu1 %732 }
 0x180   : > { %v1772_v59 = vsub.f32 %v1624_v1, %v733_v43  ;;  %v1775_v61 = vsub.f32 %v1630_v5, %v733_v43  ;;  %v730_v44 = vpop.xlane.xlu0 %729 }
 0x181   : > { %1368 = vpow2.f32 %v784_v2  ;;  %v1780_v45 = vsub.f32 %v1614_v60, %v730_v44  ;;  %v1783_v0 = vsub.f32 %v1618_v62, %v730_v44 }
 0x182   : > { %3217 = vst [vmem:[#allocation13_spill] sm:$0xff] %v1772_v59  ;;  %3218 = vst [vmem:[#allocation14_spill] sm:$0xff] %v1775_v61  ;;  %1370 = vpow2.f32 %v786_v41  ;;  %v820_v1 = vmul.f32 1.442695, %v1772_v59  ;;  %v822_v5 = vmul.f32 1.442695, %v1775_v61 }
 0x183   : > { %v816_v60 = vmul.f32 1.442695, %v1780_v45  ;;  %v818_v62 = vmul.f32 1.442695, %v1783_v0 }
 0x184   : > { %1372 = vpow2.f32 %v820_v1  ;;  %v709_v6 = vpop.xlane.xlu0 %708  ;;  %v712_v7 = vpop.xlane.xlu1 %711 }
 0x185   : > { %1374 = vpow2.f32 %v822_v5  ;;  %v1804_v19 = vsub.f32 %v1620_v63, %v709_v6  ;;  %v1807_v28 = vsub.f32 %v1626_v3, %v709_v6  ;;  %v1810_v2 = vsub.f32 %v1636_v8, %v712_v7 }
 0x186   : > { %1376 = vpow2.f32 %v816_v60  ;;  %v1825_v63 = vsub.f32 %v1638_v9, %v712_v7 }
 0x187   : > { %3219 = vst [vmem:[#allocation15_spill] sm:$0xff] %v1804_v19  ;;  %3220 = vst [vmem:[#allocation16_spill] sm:$0xff] %v1807_v28  ;;  %1378 = vpow2.f32 %v818_v62  ;;  %v788_v9 = vmul.f32 1.442695, %v1804_v19  ;;  %v790_v43 = vmul.f32 1.442695, %v1807_v28 }
 0x188   : > { %3221 = vst [vmem:[#allocation17_spill] sm:$0xff] %v1810_v2  ;;  %3224 = vst [vmem:[#allocation18_spill] sm:$0xff] %v1825_v63  ;;  %v792_v44 = vmul.f32 1.442695, %v1810_v2  ;;  %v794_v60 = vmul.f32 1.442695, %v1825_v63  ;;  %v736_v62 = vpop.xlane.xlu0 %735  ;;  %v715_v6 = vpop.xlane.xlu1 %714 }
 0x189   : > { %1380 = vpow2.f32 %v788_v9  ;;  %v1890_v63 = vsub.f32 %v1640_v10, %v736_v62  ;;  %v1893_v2 = vsub.f32 %v1644_v12, %v736_v62  ;;  %v1896_v61 = vsub.f32 %v1642_v11, %v715_v6 }
 0x18a   : > { %1382 = vpow2.f32 %v790_v43  ;;  %v1921_v11 = vsub.f32 %v1648_v14, %v715_v6  ;;  %v3245_v9 = vmov 0  ;;  %v3257_v28 = vmov 0 }
 0x18b   : > { %3237 = vst [vmem:[#allocation19_spill] sm:$0xff] %v1890_v63  ;;  %3238 = vst [vmem:[#allocation20_spill] sm:$0xff] %v1893_v2  ;;  %v1923_v12 = vpop.eup %1368  ;;  %v3246_v9 = vsel %vm1929_vm5, 4294967295, %v3245_v9  ;;  %1384 = vpow2.f32 %v792_v44  ;;  %v824_v62 = vmul.f32 1.442695, %v1890_v63  ;;  %v3251_v44 = vmov 0 }
 0x18c   : > { %3239 = vst [vmem:[#allocation21_spill] sm:$0xff] %v1896_v61  ;;  %3244 = vst [vmem:[#allocation22_spill] sm:$0xff] %v1921_v11  ;;  %v826_v43 = vmul.f32 1.442695, %v1893_v2  ;;  %v796_v14 = vmul.f32 1.442695, %v1896_v61  ;;  %v1946_v47 = vpop.eup %1370  ;;  %1386 = vpow2.f32 %v794_v60  ;;  %v739_v2 = vpop.xlane.xlu1 %738 }
 0x18d   : > { %v3252_v44 = vsel %vm1952_vm14, 4294967295, %v3251_v44  ;;  %v798_v61 = vmul.f32 1.442695, %v1921_v11  ;;  %v718_v63 = vpop.xlane.xlu0 %717  ;;  %v848_v48 = vsel %vm1942_vm12, %v1923_v12, 0.0  ;;  %v3258_v28 = vsel %vm1974_vm6, 4294967295, %v3257_v28  ;;  %vm2031_vm5 = vmxor %vm3272_vm9, %vm1505_vm0 }
 0x18e   : > { %1388 = vpow2.f32 %v824_v62  ;;  %v1979_v54 = vsub.f32 %v1650_v15, %v739_v2  ;;  %v1982_v60 = vsub.f32 %v1654_v17, %v739_v2  ;;  %v1985_v11 = vsub.f32 %v1660_v20, %v718_v63  ;;  %v1995_v46 = vpop.eup %1372 }
 0x18f   : > { %vm3262_vm12 = vcmp.eq.s32.totalorder %v1759_v40, 1  ;;  %vm3265_vm6 = vcmp.eq.s32.totalorder %v1738_v4, %v1746_v18  ;;  %1390 = vpow2.f32 %v826_v43  ;;  %v2010_v17 = vsub.f32 %v1662_v21, %v718_v63  ;;  %v2023_v2 = vpop.eup %1374 }
 0x190   : > { %3259 = vst [vmem:[#allocation23_spill] sm:$0xff] %v1979_v54  ;;  %3260 = vst [vmem:[#allocation24_spill] sm:$0xff] %v1982_v60  ;;  %1392 = vpow2.f32 %v796_v14  ;;  %v828_v41 = vmul.f32 1.442695, %v1979_v54  ;;  %v830_v63 = vmul.f32 1.442695, %v1982_v60  ;;  %v2046_v6 = vpop.eup %1376  ;;  %vm3278_vm9 = vcmp.eq.s32.totalorder %v1730_v57, %v1746_v18 }
 0x191   : > { %3261 = vst [vmem:[#allocation25_spill] sm:$0xff] %v1985_v11  ;;  %vm1991_vm8 = vmand %vm1885_vm3, %vm3262_vm12  ;;  %vm3269_vm3 = vcmp.eq.s32.totalorder %v1757_v36, 1  ;;  %v800_v62 = vmul.f32 1.442695, %v1985_v11  ;;  %1394 = vpow2.f32 %v798_v61  ;;  %v802_v10 = vmul.f32 1.442695, %v2010_v17  ;;  %v742_v54 = vpop.xlane.xlu0 %741  ;;  %v721_v11 = vpop.xlane.xlu1 %720 }
 0x192   : > { %vm2003_vm14 = vmxor %vm3265_vm6, %vm1505_vm0  ;;  %3268 = vst [vmem:[#allocation26_spill] sm:$0xff] %v2010_v17  ;;  %v849_v20 = vsel %vm1991_vm8, %v1946_v47, 0.0  ;;  %v2070_v19 = vpop.eup %1378  ;;  %1396 = vpow2.f32 %v828_v41  ;;  %v2083_v61 = vsub.f32 %v1664_v22, %v742_v54  ;;  %v2086_v8 = vsub.f32 %v1668_v24, %v742_v54 }
 0x193   : > { %vm2019_vm12 = vmand %vm1818_vm1, %vm3269_vm3  ;;  %v880_v60 = vadd.f32 %v849_v20, %v848_v48  ;;  %v2089_v20 = vsub.f32 %v1666_v23, %v721_v11  ;;  %v3294_v22 = vmov 0  ;;  %1398 = vpow2.f32 %v830_v63 }
 0x194   : > { %vm3275_vm1 = vmmov %vm3269_vm3  ;;  %3287 = vst [vmem:[#allocation27_spill] sm:$0xff] %v2083_v61  ;;  %v2108_v23 = vsub.f32 %v1672_v26, %v721_v11  ;;  %v864_v24 = vsel %vm2019_vm12, %v2046_v6, 0.0  ;;  %1400 = vpow2.f32 %v800_v62  ;;  %v832_v4 = vmul.f32 1.442695, %v2083_v61 }
 0x195   : > { %vm2042_vm8 = vmand %vm1916_vm7, %vm3275_vm1  ;;  %vm3281_vm7 = vcmp.eq.s32.totalorder %v1759_v40, 1  ;;  %3288 = vst [vmem:[#allocation28_spill] sm:$0xff] %v2086_v8  ;;  %881 = vadd.xlane.f32.xlu1 %v880_v60  ;;  %v2124_v60 = vpop.eup %1380  ;;  %v834_v11 = vmul.f32 1.442695, %v2086_v8  ;;  %v804_v3 = vmul.f32 1.442695, %v2089_v20  ;;  %1402 = vpow2.f32 %v802_v10  ;;  %v745_v61 = vpop.xlane.xlu1 %744 }
 0x196   : > { %vm2052_vm3 = vmxor %vm3278_vm9, %vm1505_vm0  ;;  %v866_v57 = vsel %vm2042_vm8, %v1995_v46, 0.0  ;;  %vm3284_vm9 = vcmp.eq.s32.totalorder %v1716_v49, %v1744_v16  ;;  %3289 = vst [vmem:[#allocation29_spill] sm:$0xff] %v2089_v20  ;;  %v2145_v41 = vpop.eup %1382  ;;  %v806_v62 = vmul.f32 1.442695, %v2108_v23  ;;  %v724_v20 = vpop.xlane.xlu0 %723  ;;  %v3313_v10 = vmov 0 }
 0x197   : > { %vm2063_vm1 = vmand %vm1841_vm11, %vm3281_vm7  ;;  %3296 = vst [vmem:[#allocation30_spill] sm:$0xff] %v2108_v23  ;;  %1404 = vpow2.f32 %v832_v4  ;;  %v2181_v7 = vsub.f32 %v1678_v29, %v745_v61  ;;  %v2202_v29 = vsub.f32 %v1684_v32, %v724_v20  ;;  %v3330_v32 = vmov 0 }
 0x198   : > { %vm2076_vm6 = vmxor %vm3284_vm9, %vm1505_vm0  ;;  %vm3293_vm9 = vcmp.eq.s32.totalorder %v1716_v49, %v1746_v18  ;;  %v865_v54 = vsel %vm2063_vm1, %v2070_v19, 0.0  ;;  %vm3306_vm1 = vcmp.eq.s32.totalorder %v1718_v50, %v1746_v18  ;;  %1406 = vpow2.f32 %v834_v11 }
 0x199   : > { %vm3290_vm8 = vmmov %vm3281_vm7  ;;  %v904_v8 = vadd.f32 %v865_v54, %v864_v24  ;;  %v2178_v24 = vsub.f32 %v1674_v27, %v745_v61  ;;  %3316 = vst [vmem:[#allocation32_spill] sm:$0xff] %v2181_v7  ;;  %v3321_v27 = vmov 0  ;;  %1408 = vpow2.f32 %v804_v3 }
 0x19a   : > { %vm2095_vm7 = vmand %vm1962_vm10, %vm3290_vm8  ;;  %vm3297_vm10 = vcmp.eq.s32.totalorder %v1757_v36, 1  ;;  %3323 = vst [vmem:[#allocation33_spill] sm:$0xff] %v2202_v29  ;;  %v3337_v11 = vmov 0  ;;  %1410 = vpow2.f32 %v806_v62  ;;  %v808_v3 = vmul.f32 1.442695, %v2202_v29 }
 0x19b   : > { %vm2103_vm11 = vmxor %vm3293_vm9, %vm1505_vm0  ;;  %vm3300_vm9 = vcmp.eq.s32.totalorder %v1718_v50, %v1744_v16  ;;  %v867_v1 = vsel %vm2095_vm7, %v2023_v2, 0.0  ;;  %v2167_v50 = vpop.eup %1384  ;;  %3315 = vst [vmem:[#allocation31_spill] sm:$0xff] %v2178_v24  ;;  %905 = vadd.xlane.f32.xlu0 %v904_v8  ;;  %v3344_v62 = vmov 0 }
 0x19c   : > { %v3295_v22 = vsel %vm2103_vm11, 4294967295, %v3294_v22  ;;  %vm2120_vm8 = vmand %vm1831_vm15, %vm3297_vm10  ;;  %vm3303_vm15 = vcmp.eq.s32.totalorder %v1759_v40, 1  ;;  %v907_v43 = vadd.f32 %v867_v1, %v866_v57  ;;  %v2191_v23 = vpop.eup %1386  ;;  %v2205_v57 = vsub.f32 %v1686_v33, %v724_v20  ;;  %v748_v1 = vpop.xlane.xlu0 %747 }
 0x19d   : > { %vm2130_vm11 = vmxor %vm3300_vm9, %vm1505_vm0  ;;  %v850_v59 = vsel %vm2120_vm8, %v2124_v60, 0.0  ;;  %v2218_v4 = vpop.eup %1388  ;;  %v836_v33 = vmul.f32 1.442695, %v2178_v24  ;;  %vm3332_vm8 = vcmp.eq.s32.totalorder %v1759_v40, 1 }
 0x19e   : > { %vm2141_vm12 = vmand %vm1852_vm2, %vm3303_vm15  ;;  %vm3309_vm2 = vcmp.eq.s32.totalorder %v1757_v36, 1  ;;  %vm3312_vm15 = vcmp.eq.s32.totalorder %v1720_v51, %v1744_v16  ;;  %3324 = vst [vmem:[#allocation34_spill] sm:$0xff] %v2205_v57  ;;  %908 = vadd.xlane.f32.xlu1 %v907_v43  ;;  %v2241_v5 = vpop.eup %1390  ;;  %v810_v55 = vmul.f32 1.442695, %v2205_v57  ;;  %v727_v43 = vpop.xlane.xlu1 %726 }
 0x19f   : > { %vm2151_vm10 = vmxor %vm3306_vm1, %vm1505_vm0  ;;  %v851_v8 = vsel %vm2141_vm12, %v2145_v41, 0.0  ;;  %vm3339_vm12 = vcmp.eq.s32.totalorder %v1757_v36, 1  ;;  %v2261_v24 = vpop.eup %1392  ;;  %1412 = vpow2.f32 %v836_v33 }
 0x1a0   : > { %vm2163_vm9 = vmand %vm1875_vm13, %vm3309_vm2  ;;  %vm3317_vm13 = vcmp.eq.s32.totalorder %v1759_v40, 1  ;;  %vm3320_vm2 = vcmp.eq.s32.totalorder %v1720_v51, %v1746_v18  ;;  %v2288_v57 = vpop.eup %1394 }
 0x1a1   : > { %vm2173_vm1 = vmxor %vm3312_vm15, %vm1505_vm0 }
 0x1a2   : > { %v3314_v10 = vsel %vm2173_vm1, 4294967295, %v3313_v10  ;;  %vm2187_vm7 = vmand %vm1902_vm4, %vm3317_vm13  ;;  %vm3325_vm4 = vcmp.eq.s32.totalorder %v1757_v36, 1  ;;  %vm3326_vm13 = vnez %v3246_v9  ;;  %v838_v9 = vmul.f32 1.442695, %v2181_v7 }
 0x1a3   : > { %vm2197_vm15 = vmxor %vm3320_vm2, %vm1505_vm0  ;;  %v853_v15 = vsel %vm2187_vm7, %v2191_v23, 0.0  ;;  %vm3365_vm7 = vcmp.eq.s32.totalorder %v1742_v13, %v1746_v18 }
 0x1a4   : > { %v3322_v27 = vsel %vm2197_vm15, 4294967295, %v3321_v27  ;;  %vm2214_vm2 = vmand %vm3326_vm13, %vm3325_vm4  ;;  %vm3329_vm15 = vcmp.eq.s32.totalorder %v1749_v25, %v1744_v16  ;;  %vm3333_vm4 = vnez %v3252_v44  ;;  %v883_v44 = vadd.f32 %v851_v8, %v850_v59 }
 0x1a5   : > { %vm2224_vm1 = vmxor %vm3329_vm15, %vm1505_vm0  ;;  %vm3336_vm15 = vcmp.eq.s32.totalorder %v1749_v25, %v1746_v18  ;;  %v2272_v59 = vsub.f32 %v1688_v34, %v748_v1  ;;  %v2278_v8 = vsub.f32 %v1690_v35, %v727_v43  ;;  %v3353_v34 = vmov 0 }
 0x1a6   : > { %v3331_v32 = vsel %vm2224_vm1, 4294967295, %v3330_v32  ;;  %vm2237_vm13 = vmand %vm3333_vm4, %vm3332_vm8  ;;  %vm3340_vm8 = vnez %v3258_v28  ;;  %v2275_v28 = vsub.f32 %v1694_v37, %v748_v1  ;;  %1414 = vpow2.f32 %v838_v9  ;;  %884 = vadd.xlane.f32.xlu0 %v883_v44  ;;  %v2315_v9 = vpop.eup %1396 }
 0x1a7   : > { %vm2247_vm1 = vmxor %vm3336_vm15, %vm1505_vm0  ;;  %vm3343_vm15 = vcmp.eq.s32.totalorder %v1724_v53, %v1744_v16  ;;  %3346 = vst [vmem:[#allocation35_spill] sm:$0xff] %v2272_v59  ;;  %v2299_v35 = vsub.f32 %v1696_v38, %v727_v43  ;;  %v852_v37 = vsel %vm2163_vm9, %v2167_v50, 0.0  ;;  %1416 = vpow2.f32 %v808_v3  ;;  %v2336_v1 = vpop.eup %1398 }
 0x1a8   : > { %v3338_v11 = vsel %vm2247_vm1, 4294967295, %v3337_v11  ;;  %vm2257_vm4 = vmand %vm3340_vm8, %vm3339_vm12  ;;  %3347 = vst [vmem:[#allocation36_spill] sm:$0xff] %v2275_v28  ;;  %vm3349_vm12 = vcmp.eq.s32.totalorder %v1759_v40, 1  ;;  %v840_v17 = vmul.f32 1.442695, %v2272_v59  ;;  %1418 = vpow2.f32 %v810_v55  ;;  %v751_v59 = vpop.xlane.xlu1 %750 }
 0x1a9   : > { %vm2267_vm1 = vmxor %vm3343_vm15, %vm1505_vm0  ;;  %3348 = vst [vmem:[#allocation37_spill] sm:$0xff] %v2278_v8  ;;  %vm3352_vm15 = vcmp.eq.s32.totalorder %v1724_v53, %v1746_v18  ;;  %v842_v54 = vmul.f32 1.442695, %v2275_v28  ;;  %v812_v21 = vmul.f32 1.442695, %v2278_v8  ;;  %v886_v28 = vadd.f32 %v853_v15, %v852_v37 }
 0x1aa   : > { %v3345_v62 = vsel %vm2267_vm1, 4294967295, %v3344_v62  ;;  %vm2284_vm8 = vmand %vm2003_vm14, %vm3349_vm12  ;;  %3355 = vst [vmem:[#allocation38_spill] sm:$0xff] %v2299_v35  ;;  %vm3356_vm14 = vcmp.eq.s32.totalorder %v1757_v36, 1  ;;  %v814_v43 = vmul.f32 1.442695, %v2299_v35  ;;  %v854_v14 = vsel %vm2214_vm2, %v2261_v24, 0.0 }
 0x1ab   : > { %vm2294_vm1 = vmxor %vm3352_vm15, %vm1505_vm0  ;;  %vm3359_vm15 = vcmp.eq.s32.totalorder %v1742_v13, %v1744_v16  ;;  %v2358_v13 = vpop.eup %1400  ;;  %1420 = vpow2.f32 %v840_v17  ;;  %v855_v55 = vsel %vm2237_vm13, %v2288_v57, 0.0  ;;  %v2364_v37 = vsub.f32 %v1698_v39, %v751_v59  ;;  %887 = vadd.xlane.f32.xlu0 %v886_v28 }
 0x1ac   : > { %v3354_v34 = vsel %vm2294_vm1, 4294967295, %v3353_v34  ;;  %vm2311_vm12 = vmand %vm2031_vm5, %vm3356_vm14  ;;  %vm3362_vm5 = vcmp.eq.s32.totalorder %v1759_v40, 1  ;;  %v2367_v61 = vsub.f32 %v1704_v42, %v751_v59  ;;  %v2377_v15 = vpop.eup %1402  ;;  %1422 = vpow2.f32 %v842_v54 }
 0x1ad   : > { %vm2321_vm1 = vmxor %vm3359_vm15, %vm1505_vm0  ;;  %3371 = vst [vmem:[#allocation39_spill] sm:$0xff] %v2364_v37  ;;  %v889_v20 = vadd.f32 %v855_v55, %v854_v14  ;;  %v868_v39 = vsel %vm2257_vm4, %v2218_v4, 0.0  ;;  %v869_v42 = vsel %vm2284_vm8, %v2241_v5, 0.0  ;;  %v2393_v59 = vpop.eup %1404  ;;  %1424 = vpow2.f32 %v812_v21  ;;  %v2436_v55 = vpop.permute.xlu1 %519 }
 0x1ae   : > { %vm2332_vm9 = vmand %vm2052_vm3, %vm3362_vm5  ;;  %vm3368_vm3 = vcmp.eq.s32.totalorder %v1757_v36, 1  ;;  %3372 = vst [vmem:[#allocation40_spill] sm:$0xff] %v2367_v61  ;;  %v844_v28 = vmul.f32 1.442695, %v2364_v37  ;;  %v846_v7 = vmul.f32 1.442695, %v2367_v61  ;;  %v2405_v26 = vpop.eup %1406  ;;  %1426 = vpow2.f32 %v814_v43 }
 0x1af   : > { %vm2342_vm14 = vmxor %vm3365_vm7, %vm1505_vm0  ;;  %890 = vadd.xlane.f32.xlu1 %v889_v20  ;;  %v910_v17 = vadd.f32 %v869_v42, %v868_v39  ;;  %v870_v54 = vsel %vm2311_vm12, %v2315_v9, 0.0  ;;  %v871_v21 = vsel %vm2332_vm9, %v2336_v1, 0.0  ;;  %v2421_v14 = vpop.eup %1408  ;;  %3391 = vst [vmem:[#allocation41_spill] sm:$0xff] %v2436_v55  ;;  %v443_v36 = vadd.s32 8, %v1733_v58 }
 0x1b0   : > { %vm2354_vm15 = vmand %vm2076_vm6, %vm3368_vm3  ;;  %vm3374_vm6 = vnez %v3295_v22  ;;  %v913_v43 = vadd.f32 %v871_v21, %v870_v54  ;;  %1428 = vpow2.f32 %v844_v28  ;;  %v2467_v28 = vpop.permute.xlu0 %522 }
 0x1b1   : > { %vm3373_vm2 = vmmov %vm3362_vm5  ;;  %v856_v33 = vsel %vm2354_vm15, %v2358_v13, 0.0  ;;  %911 = vadd.xlane.f32.xlu0 %v910_v17  ;;  %vm3393_vm15 = vnez %v3331_v32  ;;  %1430 = vpow2.f32 %v846_v7  ;;  %3400 = vst [vmem:[#allocation42_spill] sm:$0xff] %v2467_v28 }
 0x1b2   : > { %vm2373_vm5 = vmand %vm3374_vm6, %vm3373_vm2 }
 0x1b3   : > { %vm3377_vm13 = vmmov %vm3368_vm3  ;;  %v857_v20 = vsel %vm2373_vm5, %v2377_v15, 0.0  ;;  %914 = vadd.xlane.f32.xlu1 %v913_v43 }
 0x1b4   : > { %vm2389_vm7 = vmand %vm2130_vm11, %vm3377_vm13  ;;  %v892_v22 = vadd.f32 %v857_v20, %v856_v33 }
 0x1b5   : > { %vm3380_vm4 = vmmov %vm3373_vm2  ;;  %v858_v39 = vsel %vm2389_vm7, %v2421_v14, 0.0 }
 0x1b6   : > { %vm2401_vm8 = vmand %vm2151_vm10, %vm3380_vm4  ;;  %vm3384_vm10 = vnez %v3314_v10  ;;  %v2434_v10 = vpop.eup %1410  ;;  %893 = vadd.xlane.f32.xlu0 %v892_v22 }
 0x1b7   : > { %vm3383_vm11 = vmmov %vm3368_vm3  ;;  %v859_v48 = vsel %vm2401_vm8, %v2434_v10, 0.0  ;;  %vm3402_vm8 = vnez %v3345_v62 }
 0x1b8   : > { %vm2417_vm3 = vmand %vm3384_vm10, %vm3383_vm11  ;;  %v895_v17 = vadd.f32 %v859_v48, %v858_v39  ;;  %v2588_v48 = vstv %s1343_s9 }
 0x1b9   : > { %vm3387_vm12 = vmmov %vm3373_vm2  ;;  %vm3388_vm2 = vnez %v3322_v27  ;;  %v2449_v27 = vpop.eup %1412 }
 0x1ba   : > { %vm2430_vm9 = vmand %vm3388_vm2, %vm3387_vm12  ;;  %v2465_v42 = vpop.eup %1414  ;;  %vm3205_vm12 = vcmp.eq.s32.totalorder %v2436_v55, %v1744_v16  ;;  %896 = vadd.xlane.f32.xlu1 %v895_v17 }
 0x1bb   : > { %vm3392_vm6 = vmmov %vm3383_vm11 }
 0x1bc   : > { %vm2445_vm13 = vmand %vm3393_vm15, %vm3392_vm6 }
 0x1bd   : > { %vm3396_vm5 = vmmov %vm3380_vm4  ;;  %vm3397_vm4 = vnez %v3338_v11  ;;  %v2477_v11 = vpop.eup %1416  ;;  %v872_v3 = vsel %vm2445_vm13, %v2393_v59, 0.0 }
 0x1be   : > { %vm2461_vm11 = vmand %vm3397_vm4, %vm3396_vm5  ;;  %v2489_v54 = vpop.eup %1418  ;;  %v860_v62 = vsel %vm2417_vm3, %v2477_v11, 0.0 }
 0x1bf   : > { %vm3401_vm7 = vmmov %vm3392_vm6  ;;  %vm3406_vm6 = vnez %v3354_v34  ;;  %v2504_v21 = vpop.eup %1420  ;;  %v861_v43 = vsel %vm2430_vm9, %v2489_v54, 0.0  ;;  %v873_v44 = vsel %vm2461_vm11, %v2405_v26, 0.0 }
 0x1c0   : > { %vm2473_vm10 = vmand %vm3402_vm8, %vm3401_vm7  ;;  %vm3190_vm8 = vcmp.eq.s32.totalorder %v2467_v28, %v1744_v16  ;;  %v2519_v38 = vpop.eup %1422  ;;  %v898_v33 = vadd.f32 %v861_v43, %v860_v62  ;;  %v916_v22 = vadd.f32 %v873_v44, %v872_v3 }
 0x1c1   : > { %vm3405_vm2 = vmmov %vm3396_vm5  ;;  %vm3204_vm5 = vcmp.eq.s32.totalorder %v2436_v55, %v1746_v18  ;;  %v2525_v20 = vpop.eup %1424  ;;  %v460_v55 = vadd.s32 %v2588_v48, %v1733_v58 }
 0x1c2   : > { %vm2485_vm15 = vmand %vm3406_vm6, %vm3405_vm2  ;;  %v2537_v39 = vpop.eup %1426  ;;  %899 = vadd.xlane.f32.xlu0 %v898_v33  ;;  %v862_v8 = vsel %vm2473_vm10, %v2525_v20, 0.0 }
 0x1c3   : > { %vm3409_vm4 = vmmov %vm3401_vm7  ;;  %v863_v32 = vsel %vm2485_vm15, %v2537_v39, 0.0  ;;  %v2559_v62 = vpop.eup %1428 }
 0x1c4   : > { %vm2500_vm7 = vmand %vm2321_vm1, %vm3409_vm4  ;;  %v901_v17 = vadd.f32 %v863_v32, %v862_v8  ;;  %v2573_v3 = vpop.eup %1430 }
 0x1c5   : > { %vm2515_vm3 = vmand %vm2342_vm14, %vm3405_vm2  ;;  %vm3203_vm14 = vcmp.eq.s32.totalorder %v2467_v28, %v1746_v18  ;;  %v874_v25 = vsel %vm2500_vm7, %v2449_v27, 0.0 }
 0x1c6   : > { %vm656_vm1 = vmxor %vm3205_vm12, %vm1505_vm0  ;;  %v875_v7 = vsel %vm2515_vm3, %v2465_v42, 0.0  ;;  %917 = vadd.xlane.f32.xlu0 %v916_v22  ;;  %902 = vadd.xlane.f32.xlu1 %v901_v17  ;;  %v3420_v22 = vlaneseq }
 0x1c7   : > { %vm657_vm9 = vmxor %vm3204_vm5, %vm1505_vm0  ;;  %v919_v34 = vadd.f32 %v875_v7, %v874_v25  ;;  %v444_v25 = vadd.s32 16, %v1733_v58  ;;  %v445_v7 = vadd.s32 24, %v1733_v58 }
 0x1c8   : > { %vm2545_vm6 = vmxor %vm3190_vm8, %vm1505_vm0  ;;  %v2585_v17 = vand.u32 127, %v3420_v22 }
 0x1c9   : > { %vm3416_vm13 = vmmov %vm3409_vm4 }
 0x1ca   : > { %vm700_vm11 = vmand %vm656_vm1, %vm3416_vm13  ;;  %920 = vadd.xlane.f32.xlu1 %v919_v34  ;;  %v2595_v34 = vadd.s32 128, %v2585_v17 }
 0x1cb   : > { %vm3417_vm4 = vmmov %vm3405_vm2  ;;  %v876_v43 = vsel %vm700_vm11, %v2504_v21, 0.0 }
 0x1cc   : > { %vm701_vm2 = vmand %vm657_vm9, %vm3417_vm4  ;;  %vm565_vm3 = vcmp.ne.s32.totalorder %v2595_v34, %v460_v55 }
 0x1cd   : > { %vm659_vm8 = vmxor %vm3203_vm14, %vm1505_vm0  ;;  %v877_v33 = vsel %vm701_vm2, %v2519_v38, 0.0 }
 0x1ce   : > { %vm3418_vm10 = vmmov %vm3416_vm13  ;;  %v922_v44 = vadd.f32 %v877_v33, %v876_v43 }
 0x1cf   : > { %vm702_vm0 = vmand %vm2545_vm6, %vm3418_vm10 }
 0x1d0   : > { %vm3419_vm15 = vmmov %vm3417_vm4  ;;  %v878_v63 = vsel %vm702_vm0, %v2559_v62, 0.0  ;;  %923 = vadd.xlane.f32.xlu0 %v922_v44  ;;  %v2598_v44 = vadd.s32 %v2588_v48, %v443_v36  ;;  %vm3421_vm4 = vcmp.eq.s32.totalorder %v1722_v52, %v1744_v16  ;;  %vm3422_vm0 = vcmp.eq.s32.totalorder %v1722_v52, %v1746_v18 }
 0x1d1   : > { %vm703_vm7 = vmand %vm659_vm8, %vm3419_vm15  ;;  %vm564_vm8 = vcmp.ne.s32.totalorder %v2585_v17, %v460_v55 }
 0x1d2   : > { %v879_v8 = vsel %vm703_vm7, %v2573_v3, 0.0  ;;  %vm566_vm9 = vcmp.ne.s32.totalorder %v2585_v17, %v2598_v44  ;;  %vm567_vm13 = vcmp.ne.s32.totalorder %v2595_v34, %v2598_v44  ;;  %vm596_vm2 = vmand %vm3421_vm4, %vm564_vm8  ;;  %vm3423_vm4 = vcmp.eq.s32.totalorder %v1728_v56, %v1744_v16  ;;  %v3434_v44 = vld [vmem:[#allocation3_spill] sm:$0xff] }
 0x1d3   : > { %v925_v32 = vadd.f32 %v879_v8, %v878_v63  ;;  %v2601_v63 = vadd.s32 %v2588_v48, %v444_v25  ;;  %v446_v8 = vadd.s32 32, %v1733_v58  ;;  %v449_v25 = vadd.s32 56, %v1733_v58  ;;  %vm597_vm15 = vmand %vm3422_vm0, %vm565_vm3 }
 0x1d5   : > { %926 = vadd.xlane.f32.xlu1 %v925_v32  ;;  %v447_v32 = vadd.s32 40, %v1733_v58  ;;  %vm568_vm11 = vcmp.ne.s32.totalorder %v2585_v17, %v2601_v63  ;;  %vm569_vm10 = vcmp.ne.s32.totalorder %v2595_v34, %v2601_v63  ;;  %v3442_v63 = vld [vmem:[#allocation7_spill] sm:$0xff] }
 0x1d6   : > { %vm3445_vm12 = vcmp.eq.s32.totalorder %v3442_v63, %v1746_v18 }
 0x222   : > { %v882_v40 = vpop.xlane.xlu1 %881 }
 0x223   : > { %v928_v43 = vadd.f32 %v1923_v12, %v882_v40  ;;  %v929_v33 = vadd.f32 %v1946_v47, %v882_v40  ;;  %v2606_v12 = vadd.s32 %v2588_v48, %v445_v7  ;;  %v450_v47 = vadd.s32 64, %v1733_v58 }
 0x224   : > { %v454_v7 = vadd.s32 96, %v1733_v58 }
 0x225   : > { %1432 = vlog2.f32 %v928_v43  ;;  %v448_v43 = vadd.s32 48, %v1733_v58  ;;  %vm570_vm3 = vcmp.ne.s32.totalorder %v2585_v17, %v2606_v12  ;;  %vm571_vm0 = vcmp.ne.s32.totalorder %v2595_v34, %v2606_v12 }
 0x226   : > { %1434 = vlog2.f32 %v929_v33  ;;  %v452_v33 = vadd.s32 80, %v1733_v58 }
 0x228   : > { %v906_v22 = vpop.xlane.xlu0 %905 }
 0x229   : > { %v944_v40 = vadd.f32 %v2046_v6, %v906_v22  ;;  %v945_v36 = vadd.f32 %v2070_v19, %v906_v22  ;;  %v2620_v6 = vadd.s32 %v2588_v48, %v446_v8  ;;  %v2623_v19 = vadd.s32 %v2588_v48, %v447_v32 }
 0x22a   : > { %v451_v22 = vadd.s32 72, %v1733_v58  ;;  %v2635_v8 = vadd.s32 %v2588_v48, %v449_v25  ;;  %v453_v32 = vadd.s32 88, %v1733_v58 }
 0x22b   : > { %v909_v61 = vpop.xlane.xlu1 %908  ;;  %1436 = vlog2.f32 %v944_v40  ;;  %v2632_v40 = vadd.s32 %v2588_v48, %v448_v43 }
 0x22c   : > { %v946_v37 = vadd.f32 %v1995_v46, %v909_v61  ;;  %v947_v28 = vadd.f32 %v2023_v2, %v909_v61  ;;  %1438 = vlog2.f32 %v945_v36  ;;  %v2627_v2 = vadd.s32 %v2588_v48, %v450_v47 }
 0x22d   : > { %v2639_v36 = vadd.s32 %v2588_v48, %v452_v33  ;;  %v2642_v47 = vadd.s32 %v2588_v48, %v454_v7 }
 0x22e   : > { %1440 = vlog2.f32 %v946_v37  ;;  %vm580_vm1 = vcmp.ne.s32.totalorder %v2585_v17, %v2627_v2  ;;  %vm581_vm6 = vcmp.ne.s32.totalorder %v2595_v34, %v2627_v2 }
 0x22f   : > { %1442 = vlog2.f32 %v947_v28  ;;  %v1433_v43 = vpop.eup %1432  ;;  %v2651_v28 = vadd.s32 %v2588_v48, %v451_v22 }
 0x230   : > { %v1435_v7 = vpop.eup %1434 }
 0x231   : > { %v963_v22 = vmul.f32 0.6931472, %v1435_v7  ;;  %vm582_vm7 = vcmp.ne.s32.totalorder %v2585_v17, %v2651_v28  ;;  %vm583_vm8 = vcmp.ne.s32.totalorder %v2595_v34, %v2651_v28 }
 0x233   : > { %v885_v46 = vpop.xlane.xlu0 %884 }
 0x234   : > { %v930_v61 = vadd.f32 %v2124_v60, %v885_v46  ;;  %v931_v35 = vadd.f32 %v2145_v41, %v885_v46  ;;  %v455_v60 = vadd.s32 104, %v1733_v58  ;;  %v457_v41 = vadd.s32 120, %v1733_v58 }
 0x235   : > { %v456_v46 = vadd.s32 112, %v1733_v58  ;;  %v1437_v58 = vpop.eup %1436 }
 0x236   : > { %1444 = vlog2.f32 %v930_v61  ;;  %v961_v61 = vmul.f32 0.6931472, %v1433_v43  ;;  %v2671_v29 = vadd.s32 %v2588_v48, %v457_v41  ;;  %v993_v41 = vmul.f32 0.6931472, %v1437_v58 }
 0x237   : > { %1446 = vlog2.f32 %v931_v35  ;;  %v2660_v35 = vadd.s32 %v2588_v48, %v453_v32 }
 0x238   : > { %v888_v37 = vpop.xlane.xlu0 %887  ;;  %v1024_v43 = vsub.f32 %v1752_v30, %v961_v61  ;;  %v2687_v30 = vadd.s32 %v2588_v48, %v456_v46  ;;  %v1040_v52 = vsub.f32 %v1780_v45, %v993_v41 }
 0x239   : > { %v932_v25 = vadd.f32 %v2167_v50, %v888_v37  ;;  %v933_v33 = vadd.f32 %v2191_v23, %v888_v37  ;;  %v2668_v37 = vadd.s32 %v2588_v48, %v455_v60  ;;  %v1439_v60 = vpop.eup %1438 }
 0x23a   : > { %v1441_v7 = vpop.eup %1440 }
 0x23b   : > { %1448 = vlog2.f32 %v932_v25  ;;  %v1443_v58 = vpop.eup %1442  ;;  %v2700_v48 = vmul.f32 0.6931472, %v1441_v7 }
 0x23c   : > { %v891_v53 = vpop.xlane.xlu1 %890  ;;  %1450 = vlog2.f32 %v933_v33  ;;  %v1056_v33 = vsel %vm596_vm2, %v1024_v43, 0.0  ;;  %vm2715_vm2 = vmand %vm3423_vm4, %vm580_vm1  ;;  %vm572_vm1 = vcmp.ne.s32.totalorder %v2585_v17, %v2620_v6 }
 0x23d   : > { %v934_v50 = vadd.f32 %v2261_v24, %v891_v53  ;;  %v935_v23 = vadd.f32 %v2288_v57, %v891_v53  ;;  %v1025_v57 = vsub.f32 %v1755_v31, %v963_v22  ;;  %v995_v31 = vmul.f32 0.6931472, %v1439_v60  ;;  %v3427_v60 = vld [vmem:[#allocation15_spill] sm:$0xff] }
 0x23e   : > { %v912_v32 = vpop.xlane.xlu0 %911  ;;  %v2703_v22 = vmul.f32 0.6931472, %v1443_v58 }
 0x23f   : > { %1452 = vlog2.f32 %v934_v50  ;;  %v948_v53 = vadd.f32 %v2218_v4, %v912_v32  ;;  %v949_v24 = vadd.f32 %v2241_v5, %v912_v32  ;;  %v1057_v46 = vsel %vm597_vm15, %v1025_v57, 0.0 }
 0x240   : > { %1454 = vlog2.f32 %v935_v23  ;;  %v915_v25 = vpop.xlane.xlu1 %914  ;;  %v1445_v61 = vpop.eup %1444  ;;  %vm3426_vm15 = vcmp.eq.s32.totalorder %v1728_v56, %v1746_v18  ;;  %v1072_v57 = vsel %vm2715_vm2, %v1040_v52, 0.0  ;;  %v3433_v52 = vld [vmem:[#allocation14_spill] sm:$0xff] }
 0x241   : > { %1456 = vlog2.f32 %v948_v53  ;;  %v950_v4 = vadd.f32 %v2315_v9, %v915_v25  ;;  %v951_v5 = vadd.f32 %v2336_v1, %v915_v25  ;;  %v1447_v1 = vpop.eup %1446  ;;  %v965_v23 = vmul.f32 0.6931472, %v1445_v61  ;;  %vm613_vm14 = vmand %vm3426_vm15, %vm581_vm6  ;;  %v3428_v25 = vld [vmem:[#allocation2_spill] sm:$0xff] }
 0x242   : > { %1458 = vlog2.f32 %v949_v24  ;;  %v967_v43 = vmul.f32 0.6931472, %v1447_v1  ;;  %vm3429_vm6 = vcmp.eq.s32.totalorder %v3428_v25, %v1744_v16  ;;  %vm584_vm15 = vcmp.ne.s32.totalorder %v2585_v17, %v2639_v36 }
 0x243   : > { %v894_v55 = vpop.xlane.xlu0 %893  ;;  %1460 = vlog2.f32 %v950_v4  ;;  %v1026_v41 = vsub.f32 %v3427_v60, %v965_v23  ;;  %vm598_vm4 = vmand %vm3429_vm6, %vm566_vm9  ;;  %v3430_v4 = vld [vmem:[#allocation16_spill] sm:$0xff]  ;;  %vm3431_vm9 = vcmp.eq.s32.totalorder %v3428_v25, %v1746_v18  ;;  %vm573_vm6 = vcmp.ne.s32.totalorder %v2595_v34, %v2620_v6  ;;  %v3438_v23 = vld [vmem:[#allocation17_spill] sm:$0xff] }
 0x244   : > { %v936_v50 = vadd.f32 %v2358_v13, %v894_v55  ;;  %v937_v9 = vadd.f32 %v2377_v15, %v894_v55  ;;  %1462 = vlog2.f32 %v951_v5  ;;  %v1088_v13 = vadd.f32 %v1057_v46, %v1056_v33  ;;  %vm599_vm2 = vmand %vm3431_vm9, %vm567_vm13  ;;  %v3466_v6 = vld [vmem:[#allocation5_spill] sm:$0xff] }
 0x245   : > { %v1041_v15 = vsub.f32 %v1783_v0, %v995_v31  ;;  %v1449_v56 = vpop.eup %1448  ;;  %v1027_v5 = vsub.f32 %v3430_v4, %v967_v43  ;;  %v1058_v58 = vsel %vm598_vm4, %v1026_v41, 0.0  ;;  %v1043_v61 = vsub.f32 %v3433_v52, %v2703_v22  ;;  %v3444_v41 = vld [vmem:[#allocation18_spill] sm:$0xff] }
 0x246   : > { %1464 = vlog2.f32 %v936_v50  ;;  %1089 = vadd.xlane.f32.xlu0 %v1088_v13  ;;  %v1451_v7 = vpop.eup %1450  ;;  %v969_v31 = vmul.f32 0.6931472, %v1449_v56  ;;  %vm3435_vm4 = vcmp.eq.s32.totalorder %v3434_v44, %v1744_v16  ;;  %vm574_vm13 = vcmp.ne.s32.totalorder %v2585_v17, %v2623_v19 }
 0x247   : > { %v897_v32 = vpop.xlane.xlu1 %896  ;;  %1466 = vlog2.f32 %v937_v9  ;;  %v1073_v2 = vsel %vm613_vm14, %v1041_v15, 0.0  ;;  %vm585_vm14 = vcmp.ne.s32.totalorder %v2595_v34, %v2639_v36  ;;  %vm2766_vm5 = vmand %vm3435_vm4, %vm568_vm11  ;;  %v1059_v45 = vsel %vm599_vm2, %v1027_v5, 0.0  ;;  %v3446_v5 = vld [vmem:[#allocation4_spill] sm:$0xff] }
 0x248   : > { %v938_v53 = vadd.f32 %v2421_v14, %v897_v32  ;;  %v939_v24 = vadd.f32 %v2434_v10, %v897_v32  ;;  %v1112_v33 = vadd.f32 %v1073_v2, %v1072_v57  ;;  %v1028_v32 = vsub.f32 %v3438_v23, %v969_v31  ;;  %vm615_vm2 = vmand %vm3445_vm12, %vm583_vm8  ;;  %v3461_v15 = vld [vmem:[#allocation20_spill] sm:$0xff] }
 0x249   : > { %v1453_v55 = vpop.eup %1452  ;;  %vm3439_vm11 = vcmp.eq.s32.totalorder %v3434_v44, %v1746_v18  ;;  %vm586_vm4 = vcmp.ne.s32.totalorder %v2585_v17, %v2660_v35  ;;  %v1075_v31 = vsel %vm615_vm2, %v1043_v61, 0.0  ;;  %vm3447_vm12 = vcmp.eq.s32.totalorder %v3446_v5, %v1744_v16 }
 0x24a   : > { %1468 = vlog2.f32 %v938_v53  ;;  %v1455_v50 = vpop.eup %1454  ;;  %v2772_v1 = vmul.f32 0.6931472, %v1453_v55  ;;  %1113 = vadd.xlane.f32.xlu0 %v1112_v33  ;;  %vm2781_vm9 = vmand %vm3439_vm11, %vm569_vm10  ;;  %vm3443_vm10 = vcmp.eq.s32.totalorder %v3442_v63, %v1744_v16  ;;  %v1060_v25 = vsel %vm2766_vm5, %v1028_v32, 0.0  ;;  %v3460_v32 = vld [vmem:[#allocation19_spill] sm:$0xff] }
 0x24b   : > { %1470 = vlog2.f32 %v939_v24  ;;  %v1457_v13 = vpop.eup %1456  ;;  %v2787_v43 = vmul.f32 0.6931472, %v1455_v50  ;;  %vm614_vm11 = vmand %vm3443_vm10, %vm582_vm7  ;;  %vm587_vm7 = vcmp.ne.s32.totalorder %v2595_v34, %v2660_v35  ;;  %vm577_vm8 = vcmp.ne.s32.totalorder %v2595_v34, %v2632_v40 }
 0x24c   : > { %v1459_v57 = vpop.eup %1458  ;;  %v2800_v2 = vmul.f32 0.6931472, %v1457_v13  ;;  %vm2826_vm5 = vmand %vm3447_vm12, %vm570_vm3  ;;  %vm3450_vm3 = vcmp.eq.s32.totalorder %v3446_v5, %v1746_v18  ;;  %vm578_vm2 = vcmp.ne.s32.totalorder %v2585_v17, %v2635_v8  ;;  %vm3453_vm10 = vcmp.eq.s32.totalorder %v1716_v49, %v1744_v16  ;;  %v3483_v5 = vld [vmem:[#allocation24_spill] sm:$0xff] }
 0x24d   : > { %v1461_v56 = vpop.eup %1460 }
 0x24e   : > { %v1044_v13 = vsub.f32 %v3460_v32, %v2800_v2 }
 0x24f   : > { %v900_v0 = vpop.xlane.xlu0 %899 }
 0x250   : > { %v940_v14 = vadd.f32 %v2477_v11, %v900_v0  ;;  %v941_v10 = vadd.f32 %v2489_v54, %v900_v0  ;;  %v971_v11 = vmul.f32 0.6931472, %v1451_v7  ;;  %v3432_v54 = vld [vmem:[#allocation13_spill] sm:$0xff] }
 0x251   : > { %v1042_v46 = vsub.f32 %v3432_v54, %v2700_v48 }
 0x252   : > { %1472 = vlog2.f32 %v940_v14  ;;  %v1463_v14 = vpop.eup %1462 }
 0x253   : > { %1474 = vlog2.f32 %v941_v10  ;;  %v918_v48 = vpop.xlane.xlu0 %917  ;;  %v903_v22 = vpop.xlane.xlu1 %902  ;;  %v2816_v10 = vmul.f32 0.6931472, %v1461_v56  ;;  %v2832_v55 = vmul.f32 0.6931472, %v1463_v14  ;;  %v3476_v14 = vld [vmem:[#allocation25_spill] sm:$0xff] }
 0x254   : > { %v952_v53 = vadd.f32 %v2393_v59, %v918_v48  ;;  %v953_v24 = vadd.f32 %v2405_v26, %v918_v48  ;;  %v942_v0 = vadd.f32 %v2525_v20, %v903_v22  ;;  %v943_v60 = vadd.f32 %v2537_v39, %v903_v22  ;;  %v1465_v4 = vpop.eup %1464  ;;  %v3491_v22 = vld [vmem:[#allocation34_spill] sm:$0xff] }
 0x255   : > { %v1091_v59 = vadd.f32 %v1059_v45, %v1058_v58  ;;  %v1029_v26 = vsub.f32 %v3444_v41, %v971_v11  ;;  %v1003_v20 = vmul.f32 0.6931472, %v1459_v57  ;;  %v1074_v39 = vsel %vm614_vm11, %v1042_v46, 0.0  ;;  %v1467_v46 = vpop.eup %1466 }
 0x256   : > { %1476 = vlog2.f32 %v952_v53  ;;  %v977_v61 = vmul.f32 0.6931472, %v1465_v4  ;;  %v1469_v50 = vpop.eup %1468  ;;  %v979_v44 = vmul.f32 0.6931472, %v1467_v46 }
 0x257   : > { %1478 = vlog2.f32 %v953_v24  ;;  %1092 = vadd.xlane.f32.xlu1 %v1091_v59  ;;  %v921_v33 = vpop.xlane.xlu1 %920  ;;  %v1061_v7 = vsel %vm2781_vm9, %v1029_v26, 0.0  ;;  %vm2842_vm9 = vmand %vm3450_vm3, %vm571_vm0  ;;  %v1471_v48 = vpop.eup %1470  ;;  %v2874_v45 = vmul.f32 0.6931472, %v1469_v50  ;;  %v1045_v53 = vsub.f32 %v3461_v15, %v1003_v20  ;;  %v3470_v26 = vld [vmem:[#allocation21_spill] sm:$0xff]  ;;  %v3492_v15 = vld [vmem:[#allocation6_spill] sm:$0xff] }
 0x258   : > { %1480 = vlog2.f32 %v942_v0  ;;  %vm2856_vm0 = vmand %vm3453_vm10, %vm572_vm1  ;;  %v1094_v9 = vadd.f32 %v1061_v7, %v1060_v25  ;;  %v2887_v0 = vmul.f32 0.6931472, %v1471_v48  ;;  %vm3463_vm10 = vcmp.eq.s32.totalorder %v1716_v49, %v1746_v18  ;;  %v3475_v25 = vld [vmem:[#allocation22_spill] sm:$0xff]  ;;  %v3509_v20 = vld [vmem:[#allocation11_spill] sm:$0xff] }
 0x259   : > { %1482 = vlog2.f32 %v943_v60  ;;  %vm2897_vm1 = vmand %vm3463_vm10, %vm573_vm6  ;;  %vm592_vm6 = vcmp.ne.s32.totalorder %v2585_v17, %v2687_v30  ;;  %v1030_v56 = vsub.f32 %v3470_v26, %v2772_v1  ;;  %vm3472_vm10 = vcmp.eq.s32.totalorder %v3466_v6, %v1746_v18  ;;  %v3477_v1 = vld [vmem:[#allocation26_spill] sm:$0xff] }
 0x25a   : > { %1095 = vadd.xlane.f32.xlu0 %v1094_v9 }
 0x25c   : > { %v1473_v24 = vpop.eup %1472 }
 0x25d   : > { %v924_v28 = vpop.xlane.xlu0 %923  ;;  %v1475_v2 = vpop.eup %1474  ;;  %v985_v60 = vmul.f32 0.6931472, %v1473_v24  ;;  %v3496_v24 = vld [vmem:[#allocation29_spill] sm:$0xff] }
 0x25e   : > { %v956_v11 = vadd.f32 %v2504_v21, %v924_v28  ;;  %v957_v54 = vadd.f32 %v2519_v38, %v924_v28  ;;  %v954_v21 = vadd.f32 %v2449_v27, %v921_v33  ;;  %v955_v38 = vadd.f32 %v2465_v42, %v921_v33  ;;  %v3456_v42 = vld [vmem:[#allocation10_spill] sm:$0xff] }
 0x25f   : > { %v1115_v27 = vadd.f32 %v1075_v31, %v1074_v39  ;;  %vm3457_vm12 = vcmp.eq.s32.totalorder %v3456_v42, %v1744_v16  ;;  %v987_v59 = vmul.f32 0.6931472, %v1475_v2  ;;  %v1031_v39 = vsub.f32 %v3475_v25, %v2787_v43  ;;  %v3482_v31 = vld [vmem:[#allocation23_spill] sm:$0xff] }
 0x260   : > { %1484 = vlog2.f32 %v956_v11  ;;  %vm2868_vm3 = vmand %vm3457_vm12, %vm584_vm15  ;;  %vm3462_vm15 = vcmp.eq.s32.totalorder %v3456_v42, %v1746_v18  ;;  %v1032_v28 = vsub.f32 %v3476_v14, %v977_v61  ;;  %v1033_v33 = vsub.f32 %v3477_v1, %v979_v44  ;;  %v1477_v7 = vpop.eup %1476 }
 0x261   : > { %1486 = vlog2.f32 %v957_v54  ;;  %vm617_vm12 = vmand %vm3462_vm15, %vm585_vm14  ;;  %1116 = vadd.xlane.f32.xlu1 %v1115_v27  ;;  %vm590_vm14 = vcmp.ne.s32.totalorder %v2585_v17, %v2668_v37  ;;  %vm3467_vm15 = vcmp.eq.s32.totalorder %v3466_v6, %v1744_v16  ;;  %v1062_v43 = vsel %vm2826_vm5, %v1030_v56, 0.0  ;;  %v3484_v54 = vld [vmem:[#allocation33_spill] sm:$0xff]  ;;  %v1479_v61 = vpop.eup %1478  ;;  %v3501_v6 = vld [vmem:[#allocation27_spill] sm:$0xff] }
 0x262   : > { %v927_v23 = vpop.xlane.xlu1 %926  ;;  %1488 = vlog2.f32 %v954_v21  ;;  %vm2911_vm11 = vmand %vm3467_vm15, %vm574_vm13  ;;  %vm3478_vm15 = vcmp.ne.s32.totalorder %v2585_v17, %v2632_v40  ;;  %v1046_v4 = vsub.f32 %v3482_v31, %v2816_v10  ;;  %v1047_v11 = vsub.f32 %v3483_v5, %v2832_v55  ;;  %v3485_v21 = vld [vmem:[#allocation8_spill] sm:$0xff]  ;;  %v1481_v50 = vpop.eup %1480  ;;  %v3513_v31 = vld [vmem:[#allocation37_spill] sm:$0xff] }
 0x263   : > { %v958_v57 = vadd.f32 %v2559_v62, %v927_v23  ;;  %v959_v63 = vadd.f32 %v2573_v3, %v927_v23  ;;  %1490 = vlog2.f32 %v955_v38  ;;  %v1076_v62 = vsel %vm2868_vm3, %v1044_v13, 0.0  ;;  %v1483_v12 = vpop.eup %1482  ;;  %v3514_v5 = vld [vmem:[#allocation38_spill] sm:$0xff] }
 0x264   : > { %v1077_v3 = vsel %vm617_vm12, %v1045_v53, 0.0  ;;  %vm3471_vm3 = vcmp.ne.s32.totalorder %v2595_v34, %v2623_v19  ;;  %v1036_v46 = vsub.f32 %v3484_v54, %v985_v60  ;;  %vm594_vm13 = vcmp.ne.s32.totalorder %v2585_v17, %v2671_v29  ;;  %v3499_v60 = vld [vmem:[#allocation12_spill] sm:$0xff] }
 0x265   : > { %1492 = vlog2.f32 %v958_v57  ;;  %v1118_v41 = vadd.f32 %v1077_v3, %v1076_v62  ;;  %vm2925_vm12 = vmand %vm3472_vm10, %vm3471_vm3  ;;  %vm3479_vm3 = vcmp.eq.s32.totalorder %v1720_v51, %v1744_v16  ;;  %v1009_v58 = vmul.f32 0.6931472, %v1477_v7 }
 0x266   : > { %1494 = vlog2.f32 %v959_v63  ;;  %vm2941_vm10 = vmand %vm3479_vm3, %vm3478_vm15  ;;  %vm3486_vm15 = vcmp.eq.s32.totalorder %v3485_v21, %v1744_v16  ;;  %v1063_v10 = vsel %vm2842_vm9, %v1031_v39, 0.0  ;;  %v1064_v55 = vsel %vm2856_vm0, %v1032_v28, 0.0  ;;  %v3497_v63 = vld [vmem:[#allocation30_spill] sm:$0xff] }
 0x267   : > { %1119 = vadd.xlane.f32.xlu0 %v1118_v41  ;;  %vm618_vm3 = vmand %vm3486_vm15, %vm586_vm4  ;;  %v1065_v38 = vsel %vm2897_vm1, %v1033_v33, 0.0  ;;  %vm3487_vm4 = vcmp.eq.s32.totalorder %v3485_v21, %v1746_v18  ;;  %vm595_vm15 = vcmp.ne.s32.totalorder %v2595_v34, %v2671_v29  ;;  %v1011_v44 = vmul.f32 0.6931472, %v1479_v61  ;;  %v3502_v41 = vld [vmem:[#allocation28_spill] sm:$0xff]  ;;  %v3517_v21 = vld [vmem:[#allocation35_spill] sm:$0xff] }
 0x268   : > { %vm619_vm5 = vmand %vm3487_vm4, %vm587_vm7  ;;  %v1097_v52 = vadd.f32 %v1063_v10, %v1062_v43  ;;  %v1100_v9 = vadd.f32 %v1065_v38, %v1064_v55  ;;  %v1078_v27 = vsel %vm618_vm3, %v1046_v4, 0.0  ;;  %vm3488_vm9 = vcmp.eq.s32.totalorder %v1720_v51, %v1746_v18  ;;  %v3518_v10 = vld [vmem:[#allocation36_spill] sm:$0xff]  ;;  %v3519_v38 = vld [vmem:[#allocation31_spill] sm:$0xff] }
 0x269   : > { %vm2982_vm0 = vmand %vm3488_vm9, %vm577_vm8  ;;  %v989_v48 = vmul.f32 0.6931472, %v1481_v50  ;;  %v1079_v42 = vsel %vm619_vm5, %v1047_v11, 0.0  ;;  %v1037_v23 = vsub.f32 %v3491_v22, %v987_v59  ;;  %v1068_v32 = vsel %vm2941_vm10, %v1036_v46, 0.0  ;;  %v3515_v46 = vld [vmem:[#allocation41_spill] sm:$0xff]  ;;  %v3525_v22 = vld [vmem:[#allocation42_spill] sm:$0xff] }
 0x26a   : > { %v1485_v13 = vpop.eup %1484  ;;  %vm3493_vm7 = vcmp.eq.s32.totalorder %v3492_v15, %v1744_v16  ;;  %v991_v40 = vmul.f32 0.6931472, %v1483_v12  ;;  %1098 = vadd.xlane.f32.xlu1 %v1097_v52  ;;  %v1121_v53 = vadd.f32 %v1079_v42, %v1078_v27  ;;  %v1034_v57 = vsub.f32 %v3496_v24, %v2874_v45  ;;  %v3522_v27 = vld [vmem:[#allocation32_spill] sm:$0xff] }
 0x26b   : > { %vm2995_vm1 = vmand %vm3493_vm7, %vm578_vm2  ;;  %1101 = vadd.xlane.f32.xlu0 %v1100_v9  ;;  %v1035_v2 = vsub.f32 %v3497_v63, %v2887_v0  ;;  %v1487_v36 = vpop.eup %1486  ;;  %vm3498_vm8 = vcmp.ne.s32.totalorder %v2585_v17, %v2642_v47  ;;  %vm3500_vm2 = vcmp.eq.s32.totalorder %v3499_v60, %v1744_v16  ;;  %v1017_v62 = vmul.f32 0.6931472, %v1485_v13 }
 0x26c   : > { %vm620_vm10 = vmand %vm3500_vm2, %vm3498_vm8  ;;  %v1069_v3 = vsel %vm2982_vm0, %v1037_v23, 0.0  ;;  %v1048_v59 = vsub.f32 %v3501_v6, %v1009_v58  ;;  %v1049_v26 = vsub.f32 %v3502_v41, %v1011_v44  ;;  %v1489_v45 = vpop.eup %1488  ;;  %vm3503_vm3 = vcmp.ne.s32.totalorder %v2595_v34, %v2642_v47  ;;  %v3530_v6 = vld [vmem:[#allocation9_spill] sm:$0xff] }
 0x26d   : > { %vm3504_vm4 = vcmp.eq.s32.totalorder %v3499_v60, %v1746_v18  ;;  %v1019_v0 = vmul.f32 0.6931472, %v1487_v36  ;;  %v1106_v56 = vadd.f32 %v1069_v3, %v1068_v32  ;;  %v1066_v25 = vsel %vm2911_vm11, %v1034_v57, 0.0  ;;  %v1491_v14 = vpop.eup %1490  ;;  %v3527_v32 = vld [vmem:[#allocation39_spill] sm:$0xff] }
 0x26e   : > { %vm621_vm5 = vmand %vm3504_vm4, %vm3503_vm3  ;;  %v1067_v39 = vsel %vm2925_vm12, %v1035_v2, 0.0  ;;  %vm3505_vm9 = vcmp.ne.s32.totalorder %v2595_v34, %v2635_v8  ;;  %vm3506_vm0 = vcmp.eq.s32.totalorder %v3492_v15, %v1746_v18  ;;  %v1013_v28 = vmul.f32 0.6931472, %v1489_v45  ;;  %1122 = vadd.xlane.f32.xlu1 %v1121_v53  ;;  %v3528_v15 = vld [vmem:[#allocation40_spill] sm:$0xff] }
 0x26f   : > { %vm3029_vm7 = vmand %vm3506_vm0, %vm3505_vm9  ;;  %v1103_v1 = vadd.f32 %v1067_v39, %v1066_v25  ;;  %v1080_v33 = vsel %vm620_vm10, %v1048_v59, 0.0  ;;  %v1081_v7 = vsel %vm621_vm5, %v1049_v26, 0.0  ;;  %v1493_v49 = vpop.eup %1492  ;;  %vm3510_vm11 = vcmp.eq.s32.totalorder %v3509_v20, %v1744_v16  ;;  %1107 = vadd.xlane.f32.xlu0 %v1106_v56 }
 0x270   : > { %vm3039_vm12 = vmand %vm3510_vm11, %vm590_vm14  ;;  %v1015_v19 = vmul.f32 0.6931472, %v1491_v14  ;;  %v1124_v43 = vadd.f32 %v1081_v7, %v1080_v33  ;;  %v1038_v4 = vsub.f32 %v3513_v31, %v989_v48  ;;  %v1039_v11 = vsub.f32 %v3514_v5, %v991_v40  ;;  %v1495_v54 = vpop.eup %1494 }
 0x271   : > { %vm3516_vm8 = vcmp.eq.s32.totalorder %v3515_v46, %v1744_v16  ;;  %v1021_v61 = vmul.f32 0.6931472, %v1493_v49  ;;  %v1052_v58 = vsub.f32 %v3517_v21, %v1017_v62  ;;  %v1053_v55 = vsub.f32 %v3518_v10, %v1019_v0 }
 0x272   : > { %vm624_vm2 = vmand %vm3516_vm8, %vm592_vm6  ;;  %v1050_v50 = vsub.f32 %v3519_v38, %v1013_v28  ;;  %vm3520_vm14 = vcmp.ne.s32.totalorder %v2595_v34, %v2687_v30  ;;  %vm3521_vm10 = vcmp.eq.s32.totalorder %v3515_v46, %v1746_v18  ;;  %v1023_v44 = vmul.f32 0.6931472, %v1495_v54  ;;  %1104 = vadd.xlane.f32.xlu1 %v1103_v1 }
 0x273   : > { %vm625_vm3 = vmand %vm3521_vm10, %vm3520_vm14  ;;  %v1070_v52 = vsel %vm2995_vm1, %v1038_v4, 0.0  ;;  %v1071_v9 = vsel %vm3029_vm7, %v1039_v11, 0.0  ;;  %v1051_v12 = vsub.f32 %v3522_v27, %v1015_v19  ;;  %vm3523_vm6 = vcmp.ne.s32.totalorder %v2595_v34, %v2668_v37  ;;  %1125 = vadd.xlane.f32.xlu0 %v1124_v43 }
 0x274   : > { %vm3524_vm4 = vcmp.eq.s32.totalorder %v3509_v20, %v1746_v18  ;;  %v1109_v30 = vadd.f32 %v1071_v9, %v1070_v52  ;;  %v1084_v35 = vsel %vm624_vm2, %v1052_v58, 0.0  ;;  %v1085_v48 = vsel %vm625_vm3, %v1053_v55, 0.0 }
 0x275   : > { %vm623_vm5 = vmand %vm3524_vm4, %vm3523_vm6  ;;  %v1082_v42 = vsel %vm3039_vm12, %v1050_v50, 0.0  ;;  %vm3526_vm1 = vcmp.eq.s32.totalorder %v3525_v22, %v1744_v16  ;;  %v1130_v37 = vadd.f32 %v1085_v48, %v1084_v35  ;;  %v1054_v13 = vsub.f32 %v3527_v32, %v1021_v61 }
 0x276   : > { %vm626_vm9 = vmand %vm3526_vm1, %vm594_vm13  ;;  %v1083_v23 = vsel %vm623_vm5, %v1051_v12, 0.0  ;;  %v1055_v51 = vsub.f32 %v3528_v15, %v1023_v44  ;;  %vm3529_vm0 = vcmp.eq.s32.totalorder %v3525_v22, %v1746_v18  ;;  %1110 = vadd.xlane.f32.xlu1 %v1109_v30  ;;  %v1156_v62 = vadd.s32 4294967288, %v2585_v17 }
 0x277   : > { %vm627_vm7 = vmand %vm3529_vm0, %vm595_vm15  ;;  %v1127_v40 = vadd.f32 %v1083_v23, %v1082_v42  ;;  %v1086_v53 = vsel %vm626_vm9, %v1054_v13, 0.0  ;;  %1131 = vadd.xlane.f32.xlu0 %v1130_v37  ;;  %v1163_v29 = vadd.s32 4294967280, %v2585_v17  ;;  %v1170_v18 = vadd.s32 4294967272, %v2585_v17 }
 0x278   : > { %v1087_v24 = vsel %vm627_vm7, %v1055_v51, 0.0  ;;  %v1177_v3 = vadd.s32 4294967264, %v2585_v17  ;;  %v1159_v59 = vsub.s32 %v1156_v62, %v3530_v6  ;;  %v1154_v0 = vsub.s32 %v2585_v17, %v3530_v6 }
 0x279   : > { %v1133_v16 = vadd.f32 %v1087_v24, %v1086_v53  ;;  %v1166_v41 = vsub.s32 %v1163_v29, %v3530_v6  ;;  %v1173_v56 = vsub.s32 %v1170_v18, %v3530_v6  ;;  %v1184_v25 = vadd.s32 4294967256, %v2585_v17 }
 0x27a   : > { %1128 = vadd.xlane.f32.xlu1 %v1127_v40  ;;  %v1180_v39 = vsub.s32 %v1177_v3, %v3530_v6  ;;  %v1191_v14 = vadd.s32 4294967248, %v2585_v17  ;;  %vm1161_vm13 = vcmask 130112   ;;  %vm1168_vm15 = vcmask 195712  }
 0x27b   : > { %v1187_v20 = vsub.s32 %v1184_v25, %v3530_v6  ;;  %v1198_v8 = vadd.s32 4294967240, %v2585_v17  ;;  %v1205_v19 = vadd.s32 4294967232, %v2585_v17  ;;  %vm1175_vm11 = vcmask 261312  }
 0x27c   : > { %v1194_v31 = vsub.s32 %v1191_v14, %v3530_v6  ;;  %v1212_v5 = vadd.s32 4294967224, %v2585_v17  ;;  %vm1182_vm12 = vcmask 326912   ;;  %v1219_v54 = vadd.s32 4294967216, %v2585_v17 }
 0x27d   : > { %vm1189_vm8 = vcmask 392512   ;;  %v1226_v21 = vadd.s32 4294967208, %v2585_v17  ;;  %v1201_v10 = vsub.s32 %v1198_v8, %v3530_v6  ;;  %v1208_v55 = vsub.s32 %v1205_v19, %v3530_v6 }
 0x27e   : > { %1134 = vadd.xlane.f32.xlu1 %v1133_v16  ;;  %v1233_v44 = vadd.s32 4294967200, %v2585_v17  ;;  %v1215_v52 = vsub.s32 %v1212_v5, %v3530_v6  ;;  %vm1196_vm2 = vcmask 458112   ;;  %v1240_v12 = vadd.s32 4294967192, %v2585_v17 }
 0x27f   : > { %v1222_v30 = vsub.s32 %v1219_v54, %v3530_v6  ;;  %vm1203_vm14 = vcmask 523712   ;;  %v1247_v48 = vadd.s32 4294967184, %v2585_v17  ;;  %v1229_v42 = vsub.s32 %v1226_v21, %v3530_v6 }
 0x280   : > { %vm1210_vm10 = vcmask 589312   ;;  %v1254_v37 = vadd.s32 4294967176, %v2585_v17  ;;  %v1236_v32 = vsub.s32 %v1233_v44, %v3530_v6  ;;  %vm1217_vm3 = vcmask 654912  }
 0x281   : > { %vm1224_vm6 = vcmask 720512   ;;  %v1243_v40 = vsub.s32 %v1240_v12, %v3530_v6  ;;  %v1250_v16 = vsub.s32 %v1247_v48, %v3530_v6  ;;  %vm1231_vm4 = vcmask 786112  }
 0x282   : > { %vm1238_vm5 = vcmask 851712   ;;  %vm1245_vm1 = vcmask 917312   ;;  %vm1252_vm9 = vcmask 982912   ;;  %vm1259_vm0 = vcmask 1048512  }
 0x2d3   : > { %v1090_v57 = vpop.xlane.xlu0 %1089 }
 0x2d4   : > { %v1155_v33 = vrot.slane %v1090_v57, %v1154_v0 }
 0x2d7   : > { %v1114_v63 = vpop.xlane.xlu0 %1113 }
 0x2d8   : > { %v1209_v23 = vrot.slane %v1114_v63, %v1208_v55 }
 0x2e4   : > { %v1093_v2 = vpop.xlane.xlu1 %1092 }
 0x2e5   : > { %v1160_v47 = vrot.slane %v1093_v2, %v1159_v59 }
 0x2e7   : > { %v1096_v36 = vpop.xlane.xlu0 %1095  ;;  %v1162_v4 = vsel %vm1161_vm13, %v1160_v47, %v1155_v33 }
 0x2e8   : > { %v1167_v28 = vrot.slane %v1096_v36, %v1166_v41  ;;  %v1257_v36 = vsub.s32 %v1254_v37, %v3530_v6 }
 0x2ea   : > { %v1169_v11 = vsel %vm1168_vm15, %v1167_v28, %v1162_v4 }
 0x2ee   : > { %v1117_v60 = vpop.xlane.xlu1 %1116 }
 0x2ef   : > { %v1216_v15 = vrot.slane %v1117_v60, %v1215_v52 }
 0x2f4   : > { %v3089_v34 = vpop.xlane.xlu0 %1119 }
 0x2f5   : > { %v1223_v53 = vrot.slane %v3089_v34, %v1222_v30 }
 0x2f7   : > { %v1099_v26 = vpop.xlane.xlu1 %1098 }
 0x2f8   : > { %v1102_v45 = vpop.xlane.xlu0 %1101  ;;  %v1174_v7 = vrot.slane %v1099_v26, %v1173_v56 }
 0x2f9   : > { %v1181_v43 = vrot.slane %v1102_v45, %v1180_v39 }
 0x2fa   : > { %v1176_v61 = vsel %vm1175_vm11, %v1174_v7, %v1169_v11 }
 0x2fb   : > { %v1123_v1 = vpop.xlane.xlu1 %1122  ;;  %v1183_v38 = vsel %vm1182_vm12, %v1181_v43, %v1176_v61 }
 0x2fc   : > { %v1108_v49 = vpop.xlane.xlu0 %1107  ;;  %v1230_v17 = vrot.slane %v1123_v1, %v1229_v42 }
 0x2fd   : > { %v1195_v50 = vrot.slane %v1108_v49, %v1194_v31 }
 0x2ff   : > { %v1105_v46 = vpop.xlane.xlu1 %1104 }
 0x300   : > { %v1188_v58 = vrot.slane %v1105_v46, %v1187_v20  ;;  %v1126_v27 = vpop.xlane.xlu0 %1125 }
 0x301   : > { %v1237_v60 = vrot.slane %v1126_v27, %v1236_v32 }
 0x302   : > { %v1190_v9 = vsel %vm1189_vm8, %v1188_v58, %v1183_v38 }
 0x303   : > { %v1111_v35 = vpop.xlane.xlu1 %1110  ;;  %v1197_v13 = vsel %vm1196_vm2, %v1195_v50, %v1190_v9 }
 0x304   : > { %v1202_v22 = vrot.slane %v1111_v35, %v1201_v10  ;;  %v1132_v2 = vpop.xlane.xlu0 %1131 }
 0x305   : > { %v1251_v34 = vrot.slane %v1132_v2, %v1250_v16 }
 0x306   : > { %v1204_v51 = vsel %vm1203_vm14, %v1202_v22, %v1197_v13 }
 0x307   : > { %v1211_v24 = vsel %vm1210_vm10, %v1209_v23, %v1204_v51  ;;  %v1129_v57 = vpop.xlane.xlu1 %1128 }
 0x308   : > { %v1218_v63 = vsel %vm1217_vm3, %v1216_v15, %v1211_v24  ;;  %v1244_v18 = vrot.slane %v1129_v57, %v1243_v40 }
 0x309   : > { %v1225_v62 = vsel %vm1224_vm6, %v1223_v53, %v1218_v63 }
 0x30a   : > { %v1232_v29 = vsel %vm1231_vm4, %v1230_v17, %v1225_v62 }
 0x30b   : > { %v1239_v3 = vsel %vm1238_vm5, %v1237_v60, %v1232_v29  ;;  %v1135_v59 = vpop.xlane.xlu1 %1134 }
 0x30c   : > { %v1246_v41 = vsel %vm1245_vm1, %v1244_v18, %v1239_v3  ;;  %v1258_v26 = vrot.slane %v1135_v59, %v1257_v36 }
 0x30d   : > { %v1253_v45 = vsel %vm1252_vm9, %v1251_v34, %v1246_v41 }
 0x30e   : > { %v1260_v0 = vsel %vm1259_vm0, %v1258_v26, %v1253_v45 }
 0x30f   : > { %1262 = vst [vmem:[%s217_s12] sm:$0x1] %v1260_v0 }
 0x310 PF: > { %s14_s15 = sadd.s32 1, %s1502_s15  }
 0x311   : > { %p11_p5 = scmp.ge.s32.totalorder %s14_s15, 4  }
 0x313   :  { %13 = sbr.rel (!%p11_p5) target bundleno = 1 (0x1), region = 69 }

</bundles_post_ra>
